<compile_context>
chip_gen: v7x
topology: tpu7x:2x2x1
jax: 0.10.0
libtpu: 0.0.40
codegen_flags: <defaults>
</compile_context>

<pallas_src>
import math

import jax
import jax.numpy as jnp
import numpy as np
from jax.experimental import pallas as pl
from jax.experimental.pallas import tpu as pltpu

# ---------------- synthetic small ViLT configuration ----------------
BATCH = 2
IMG_C, IMG_HW = 3, 16
PATCH = 8
N_PATCH = (IMG_HW // PATCH) ** 2              # 4 patches
PATCH_DIM = IMG_C * PATCH * PATCH             # 192
TEXT_LEN = 8
VOCAB = 50
HIDDEN = 32
NUM_HEADS = 4
HEAD_DIM = HIDDEN // NUM_HEADS                # 8
NUM_LAYERS = 2
INTERMEDIATE = 64
NUM_CLASSES = 5
LANES = 128                                   # lane-dense slab / output width
IMG_BLOCK = 1 + N_PATCH                       # image CLS + patches = 5 real tokens
SEQ_PAD = 16                                  # 8 text + 8 image-block (5 real + 3 pad)
IMG_PAD = SEQ_PAD - TEXT_LEN                  # 8
ROWS = BATCH * SEQ_PAD                        # 32 fused rows
SCORE_LANES = NUM_HEADS * ROWS                # 128 -> all-head scores are lane dense
HEAD_ROWS = BATCH * 8                         # 16-row pooler/classifier block
LN_EPS = 1e-12

# ---- bf16 weight-slab row layout (all blocks start at lane 0) ----
WQKV_OFF = 0                                  # [H, 3H]  lanes 0:96, q pre-scaled
WO_OFF = HIDDEN                               # [H, H]
WI_OFF = 2 * HIDDEN                           # [H, I]   lanes 0:64
WO2_OFF = 3 * HIDDEN                          # [4H, H]  rows 0:I real, rest zero
LAYER_W_ROWS = 3 * HIDDEN + 4 * HIDDEN        # 224
WP_OFF = NUM_LAYERS * LAYER_W_ROWS            # 448  pooler [H, H]
WC_OFF = WP_OFF + HIDDEN                      # 480  classifier [H, 128] (lane padded)
W_ROWS = WC_OFF + HIDDEN                      # 512

# ---- f32 param-slab row layout ----
BIAS_OFF = 0                                  # [ROWS, 128] attention bias tiled per head
ONES_OFF = BIAS_OFF + ROWS                    # [128, 128]  block-diag ones (denominator)
VMASK_OFF = ONES_OFF + SCORE_LANES            # [128, H]    block-diag value mask
LAYER_P_OFF = VMASK_OFF + SCORE_LANES         # 288
LAYER_P_ROWS = 8                              # ln1_g, ln1_b, bqkv, bo, ln2_g, ln2_b, bi, bo2
HEAD_P_OFF = LAYER_P_OFF + NUM_LAYERS * LAYER_P_ROWS   # 304: lnf_g, lnf_b, bp, bc
P_ROWS = HEAD_P_OFF + 8                       # 312


# ---------------- small math helpers (usable in- and out-of-kernel) ----------------
def _layernorm(x, g, b):
    # E[x^2] - mu^2 form: the two reductions are independent (overlap in schedule).
    mu = jnp.mean(x, axis=-1, keepdims=True)
    ex2 = jnp.mean(x * x, axis=-1, keepdims=True)
    var = ex2 - mu * mu
    return (x - mu) * jax.lax.rsqrt(var + LN_EPS) * g + b


def _gelu(x):
    # TODO(synk): HF ViLT's default act is exact erf-GELU; tanh approximation is
    # used here for robust Mosaic lowering (difference is ~1e-3 relative).
    c = 0.7978845608028654
    return 0.5 * x * (1.0 + jnp.tanh(c * (x + 0.044715 * x * x * x)))


# ---------------- the Pallas kernel: transformer encoder + pooler + classifier ----------------
def vilt_kernel(x_ref, p_ref, w_ref, out_ref, sc_ref):
    H, HD = HIDDEN, HEAD_DIM
    bf16 = jnp.bfloat16

    x = x_ref[...]                                            # [ROWS, H] f32
    bias = p_ref[BIAS_OFF:BIAS_OFF + ROWS, :]                 # [ROWS, 128]
    ones_bd = p_ref[ONES_OFF:ONES_OFF + SCORE_LANES, :]       # [128, 128]
    vmask = p_ref[VMASK_OFF:VMASK_OFF + SCORE_LANES, 0:H]     # [128, H]

    for l in range(NUM_LAYERS):
        woff = l * LAYER_W_ROWS
        poff = LAYER_P_OFF + l * LAYER_P_ROWS

        # ---- self-attention (pre-LN) ----
        h1 = _layernorm(x, p_ref[poff + 0:poff + 1, 0:H],
                        p_ref[poff + 1:poff + 2, 0:H])
        # fused QKV: one N=128 matmul (lanes 0:96 real, q already scaled)
        qkv = (jnp.dot(h1.astype(bf16),
                       w_ref[woff + WQKV_OFF:woff + WQKV_OFF + H, :],
                       preferred_element_type=jnp.float32)
               + p_ref[poff + 2:poff + 3, :])                 # [ROWS, 128]

        # all-head scores packed lane-dense: lanes [h*ROWS:(h+1)*ROWS] = head h
        for h in range(NUM_HEADS):
            sc_ref[:, h * ROWS:(h + 1) * ROWS] = jax.lax.dot_general(
                qkv[:, h * HD:(h + 1) * HD].astype(bf16),
                qkv[:, H + h * HD:H + (h + 1) * HD].astype(bf16),
                (((1,), (1,)), ((), ())),
                preferred_element_type=jnp.float32)

        # full 128-lane softmax (no max-subtract: scores tiny, >=1 valid key/row)
        e = jnp.exp(sc_ref[...] + bias)                       # [ROWS, 128]
        denom = jnp.dot(e, ones_bd, preferred_element_type=jnp.float32)
        prob = e * pl.reciprocal(denom, approx=True)          # [ROWS, 128]

        # context via one K=128 matmul against a block-diagonal value matrix
        v = qkv[:, 2 * H:3 * H]                               # [ROWS, H]
        v_bd = (jnp.concatenate([v] * NUM_HEADS, axis=0) * vmask).astype(bf16)
        ctx = jnp.dot(prob.astype(bf16), v_bd,
                      preferred_element_type=jnp.float32)     # [ROWS, H], head-major lanes
        attn = jnp.dot(ctx.astype(bf16),
                       w_ref[woff + WO_OFF:woff + WO_OFF + H, 0:H],
                       preferred_element_type=jnp.float32)
        x = x + attn + p_ref[poff + 3:poff + 4, 0:H]

        # ---- FFN (pre-LN); wi lane-padded to 128, wo2 row-padded to 128 ----
        h2 = _layernorm(x, p_ref[poff + 4:poff + 5, 0:H],
                        p_ref[poff + 5:poff + 6, 0:H])
        inter = _gelu(jnp.dot(h2.astype(bf16),
                              w_ref[woff + WI_OFF:woff + WI_OFF + H, :],
                              preferred_element_type=jnp.float32)
                      + p_ref[poff + 6:poff + 7, :])          # [ROWS, 128]; lanes >= I are 0
        ffn = jnp.dot(inter.astype(bf16),
                      w_ref[woff + WO2_OFF:woff + WO2_OFF + 4 * H, 0:H],
                      preferred_element_type=jnp.float32)
        x = x + ffn + p_ref[poff + 7:poff + 8, 0:H]

    # ---- final LN + pooler(tanh) + classifier on a BATCH*8-row block ----
    xs = jnp.concatenate([x[b * SEQ_PAD:b * SEQ_PAD + 8, :] for b in range(BATCH)],
                         axis=0)                              # rows {0, 8} are the CLS rows
    hp = HEAD_P_OFF
    xf = _layernorm(xs, p_ref[hp + 0:hp + 1, 0:H], p_ref[hp + 1:hp + 2, 0:H])
    pooled = jnp.tanh(jnp.dot(xf.astype(bf16),
                              w_ref[WP_OFF:WP_OFF + H, 0:H],
                              preferred_element_type=jnp.float32)
                      + p_ref[hp + 2:hp + 3, 0:H])
    out_ref[...] = (jnp.dot(pooled.astype(bf16), w_ref[WC_OFF:WC_OFF + H, :],
                            preferred_element_type=jnp.float32)
                    + p_ref[hp + 3:hp + 4, :])                # [HEAD_ROWS, 128] lane dense


# ---------------- wrapper: glue (embedding / patchify / slab packing) + pallas_call ----------------
def _embed_inputs(params, pixel_values, input_ids):
    """Fused [ROWS, H] embedded sequence: per batch, 8 text | CLS | 4 patches | 3 pad."""
    B, H = pixel_values.shape[0], HIDDEN
    text_tok = jnp.take(params["word_emb"], input_ids, axis=0)             # [B, T, H]
    text = _layernorm(text_tok + params["text_pos"][None],
                      params["tln_g"], params["tln_b"]) + params["mod_emb"][0]
    px = pixel_values.reshape(B, IMG_C, IMG_HW // PATCH, PATCH,
                              IMG_HW // PATCH, PATCH)
    patches = px.transpose(0, 2, 4, 1, 3, 5).reshape(B, N_PATCH, PATCH_DIM)
    img_p = patches @ params["patch_w"] + params["patch_b"]                # [B, 4, H]
    cls = jnp.broadcast_to(params["img_cls"][None], (B, 1, H))
    img = (jnp.concatenate([cls, img_p], axis=1)
           + params["img_pos"][None] + params["mod_emb"][1])               # [B, 5, H]
    img = jnp.pad(img, ((0, 0), (0, IMG_PAD - IMG_BLOCK), (0, 0)))         # [B, 8, H]
    return jnp.concatenate([text, img], axis=1).reshape(B * SEQ_PAD, H)


def _pack_weight_slab(params):
    """Single bf16 [W_ROWS, 128] slab holding every matmul weight (q pre-scaled)."""
    H, I, L = HIDDEN, INTERMEDIATE, NUM_LAYERS
    scale = 1.0 / math.sqrt(HEAD_DIM)
    w = jnp.zeros((W_ROWS, LANES), jnp.float32)
    for l in range(L):
        off = l * LAYER_W_ROWS
        wqkv = jnp.concatenate([params["wq"][l] * scale, params["wk"][l],
                                params["wv"][l]], axis=-1)                 # [H, 3H]
        w = w.at[off + WQKV_OFF:off + WQKV_OFF + H, 0:3 * H].set(wqkv)
        w = w.at[off + WO_OFF:off + WO_OFF + H, 0:H].set(params["wo"][l])
        w = w.at[off + WI_OFF:off + WI_OFF + H, 0:I].set(params["wi"][l])
        w = w.at[off + WO2_OFF:off + WO2_OFF + I, 0:H].set(params["wo2"][l])
    w = w.at[WP_OFF:WP_OFF + H, 0:H].set(params["wp"])
    w = w.at[WC_OFF:WC_OFF + H, 0:NUM_CLASSES].set(params["wc"])
    return w.astype(jnp.bfloat16)


def _pack_param_slab(params, attention_mask):
    """Single f32 [P_ROWS, 128] slab: attention bias, softmax helpers, LN/bias params."""
    H, I, L = HIDDEN, INTERMEDIATE, NUM_LAYERS
    scale = 1.0 / math.sqrt(HEAD_DIM)
    p = jnp.zeros((P_ROWS, LANES), jnp.float32)

    # additive attention bias: block-diag over batches, text mask + pad mask,
    # tiled NUM_HEADS times along lanes to match the packed score layout.
    key_mask = jnp.concatenate(
        [attention_mask.astype(jnp.float32),
         jnp.ones((BATCH, IMG_BLOCK), jnp.float32),
         jnp.zeros((BATCH, IMG_PAD - IMG_BLOCK), jnp.float32)], axis=1)    # [B, SEQ_PAD]
    bidx = jnp.arange(ROWS) // SEQ_PAD
    same_batch = bidx[:, None] == bidx[None, :]
    key_valid = key_mask.reshape(-1)[None, :] > 0.5
    attn_bias = jnp.where(same_batch & key_valid, 0.0, -1e9).astype(jnp.float32)
    p = p.at[BIAS_OFF:BIAS_OFF + ROWS, :].set(jnp.tile(attn_bias, (1, NUM_HEADS)))

    # block-diagonal ones: per-head softmax denominator via one MXU matmul
    blk = jnp.arange(SCORE_LANES) // ROWS
    p = p.at[ONES_OFF:ONES_OFF + SCORE_LANES, :].set(
        (blk[:, None] == blk[None, :]).astype(jnp.float32))

    # block-diagonal value mask: head h's keys map to head h's output lanes
    cblk = jnp.arange(H) // HEAD_DIM
    p = p.at[VMASK_OFF:VMASK_OFF + SCORE_LANES, 0:H].set(
        (blk[:, None] == cblk[None, :]).astype(jnp.float32))

    for l in range(L):
        off = LAYER_P_OFF + l * LAYER_P_ROWS
        bqkv = jnp.concatenate([params["bq"][l, 0] * scale, params["bk"][l, 0],
                                params["bv"][l, 0]], axis=-1)              # [3H]
        p = p.at[off + 0, 0:H].set(params["ln1_g"][l, 0])
        p = p.at[off + 1, 0:H].set(params["ln1_b"][l, 0])
        p = p.at[off + 2, 0:3 * H].set(bqkv)
        p = p.at[off + 3, 0:H].set(params["bo"][l, 0])
        p = p.at[off + 4, 0:H].set(params["ln2_g"][l, 0])
        p = p.at[off + 5, 0:H].set(params["ln2_b"][l, 0])
        p = p.at[off + 6, 0:I].set(params["bi"][l, 0])
        p = p.at[off + 7, 0:H].set(params["bo2"][l, 0])

    hp = HEAD_P_OFF
    p = p.at[hp + 0, 0:H].set(params["lnf_g"][0])
    p = p.at[hp + 1, 0:H].set(params["lnf_b"][0])
    p = p.at[hp + 2, 0:H].set(params["bp"][0])
    p = p.at[hp + 3, 0:NUM_CLASSES].set(params["bc"][0])
    return p


def custom_vilt_forward(params, pixel_values, input_ids, attention_mask):
    x0 = _embed_inputs(params, pixel_values, input_ids)           # [ROWS, H] f32
    p_slab = _pack_param_slab(params, attention_mask)             # [P_ROWS, 128] f32
    w_slab = _pack_weight_slab(params)                            # [W_ROWS, 128] bf16

    vmem = pl.BlockSpec(memory_space=pltpu.MemorySpace.VMEM)
    out = pl.pallas_call(
        vilt_kernel,
        out_shape=jax.ShapeDtypeStruct((HEAD_ROWS, LANES), jnp.float32),
        in_specs=[vmem, vmem, vmem],
        out_specs=vmem,
        scratch_shapes=[pltpu.VMEM((ROWS, SCORE_LANES), jnp.float32)],
    )(x0, p_slab, w_slab)

    logits = out[0::8, :NUM_CLASSES]          # rows {0, 8} = per-batch token 0
    return logits, None                        # matches (logits, None) of the PyTorch module


# ---------------- deterministic parameter init ----------------
def init_params(key):
    keys = jax.random.split(key, 16)
    L, H, I = NUM_LAYERS, HIDDEN, INTERMEDIATE

    def nrm(k, shape):
        return 0.02 * jax.random.normal(k, shape, dtype=jnp.float32)

    return {
        "word_emb": nrm(keys[0], (VOCAB, H)),
        "text_pos": nrm(keys[1], (TEXT_LEN, H)),
        "tln_g": jnp.ones((1, H), jnp.float32),
        "tln_b": jnp.zeros((1, H), jnp.float32),
        "mod_emb": nrm(keys[2], (2, H)),
        "patch_w": nrm(keys[3], (PATCH_DIM, H)),
        "patch_b": jnp.zeros((1, H), jnp.float32),
        "img_cls": nrm(keys[4], (1, H)),
        "img_pos": nrm(keys[5], (1 + N_PATCH, H)),
        "ln1_g": jnp.ones((L, 1, H), jnp.float32),
        "ln1_b": jnp.zeros((L, 1, H), jnp.float32),
        "wq": nrm(keys[6], (L, H, H)), "bq": jnp.zeros((L, 1, H), jnp.float32),
        "wk": nrm(keys[7], (L, H, H)), "bk": jnp.zeros((L, 1, H), jnp.float32),
        "wv": nrm(keys[8], (L, H, H)), "bv": jnp.zeros((L, 1, H), jnp.float32),
        "wo": nrm(keys[9], (L, H, H)), "bo": jnp.zeros((L, 1, H), jnp.float32),
        "ln2_g": jnp.ones((L, 1, H), jnp.float32),
        "ln2_b": jnp.zeros((L, 1, H), jnp.float32),
        "wi": nrm(keys[10], (L, H, I)), "bi": jnp.zeros((L, 1, I), jnp.float32),
        "wo2": nrm(keys[11], (L, I, H)), "bo2": jnp.zeros((L, 1, H), jnp.float32),
        "lnf_g": jnp.ones((1, H), jnp.float32),
        "lnf_b": jnp.zeros((1, H), jnp.float32),
        "wp": nrm(keys[12], (H, H)), "bp": jnp.zeros((1, H), jnp.float32),
        "wc": nrm(keys[13], (H, NUM_CLASSES)),
        "bc": jnp.zeros((1, NUM_CLASSES), jnp.float32),
    }


# ---------------- pure-JAX reference (per-batch, unfused, f32, no Pallas) ----------------
def reference_forward(params, pixel_values, input_ids, attention_mask):
    B = pixel_values.shape[0]
    text_tok = jnp.take(params["word_emb"], input_ids, axis=0)
    px = pixel_values.reshape(B, IMG_C, IMG_HW // PATCH, PATCH,
                              IMG_HW // PATCH, PATCH)
    patches = px.transpose(0, 2, 4, 1, 3, 5).reshape(B, N_PATCH, PATCH_DIM)
    img_mask = jnp.ones((B, IMG_BLOCK), jnp.float32)
    full_mask = jnp.concatenate([attention_mask.astype(jnp.float32), img_mask], axis=1)
    outs = []
    for b in range(B):
        text = _layernorm(text_tok[b] + params["text_pos"],
                          params["tln_g"], params["tln_b"]) + params["mod_emb"][0:1]
        img_p = patches[b] @ params["patch_w"] + params["patch_b"]
        img = (jnp.concatenate([params["img_cls"], img_p], axis=0)
               + params["img_pos"] + params["mod_emb"][1:2])
        x = jnp.concatenate([text, img], axis=0)
        bias = (1.0 - full_mask[b:b + 1]) * (-1e9)
        for l in range(NUM_LAYERS):
            h1 = _layernorm(x, params["ln1_g"][l], params["ln1_b"][l])
            q = h1 @ params["wq"][l] + params["bq"][l]
            k = h1 @ params["wk"][l] + params["bk"][l]
            v = h1 @ params["wv"][l] + params["bv"][l]
            heads = []
            for hh in range(NUM_HEADS):
                s0 = hh * HEAD_DIM
                qh, kh, vh = (q[:, s0:s0 + HEAD_DIM], k[:, s0:s0 + HEAD_DIM],
                              v[:, s0:s0 + HEAD_DIM])
                sc = qh @ kh.T / math.sqrt(HEAD_DIM) + bias
                heads.append(jax.nn.softmax(sc, axis=-1) @ vh)
            ctx = jnp.concatenate(heads, axis=-1)
            x = x + ctx @ params["wo"][l] + params["bo"][l]
            h2 = _layernorm(x, params["ln2_g"][l], params["ln2_b"][l])
            inter = _gelu(h2 @ params["wi"][l] + params["bi"][l])
            x = x + inter @ params["wo2"][l] + params["bo2"][l]
        xf = _layernorm(x, params["lnf_g"], params["lnf_b"])
        pooled = jnp.tanh(xf[0:1] @ params["wp"] + params["bp"])
        outs.append(pooled @ params["wc"] + params["bc"])
    return jnp.concatenate(outs, axis=0)


if __name__ == "__main__":
    key = jax.random.PRNGKey(0)
    kp, kx, kt = jax.random.split(key, 3)
    params = init_params(kp)

    pixel_values = jax.random.normal(kx, (BATCH, IMG_C, IMG_HW, IMG_HW),
                                     dtype=jnp.float32)
    input_ids = jax.random.randint(kt, (BATCH, TEXT_LEN), 0, VOCAB)
    attention_mask = jnp.array(
        [[1] * TEXT_LEN, [1] * (TEXT_LEN - 2) + [0, 0]], dtype=jnp.int32)

    logits, _ = jax.jit(custom_vilt_forward)(params, pixel_values,
                                             input_ids, attention_mask)
    logits = jax.block_until_ready(logits)

    ref = reference_forward(params, pixel_values, input_ids, attention_mask)
    np.testing.assert_allclose(np.asarray(logits), np.asarray(ref),
                               rtol=2e-2, atol=2e-2)
    print("KERNEL_OK")
</pallas_src>

<mosaic_0001>
module attributes {stable_mosaic.version = 11 : i64} {
  func.func @vilt_kernel(%arg0: memref<32x32xf32, #tpu.memory_space<vmem>>, %arg1: memref<312x128xf32, #tpu.memory_space<vmem>>, %arg2: memref<512x128xbf16, #tpu.memory_space<vmem>>, %arg3: memref<16x128xf32, #tpu.memory_space<vmem>>, %arg4: memref<32x128xf32, #tpu.memory_space<vmem>>) attributes {dimension_semantics = [], scalar_prefetch = 0 : i64, scratch_operands = 1 : i64, tpu.core_type = #tpu.core_type<tc>} {
    %c0 = arith.constant 0 : index
    %c0_0 = arith.constant 0 : index
    %0 = vector.load %arg0[%c0, %c0_0] : memref<32x32xf32, #tpu.memory_space<vmem>>, vector<32x32xf32>
    %c0_1 = arith.constant 0 : index
    %c0_2 = arith.constant 0 : index
    %1 = vector.load %arg1[%c0_1, %c0_2] : memref<312x128xf32, #tpu.memory_space<vmem>>, vector<32x128xf32>
    %c32 = arith.constant 32 : index
    %c0_3 = arith.constant 0 : index
    %2 = vector.load %arg1[%c32, %c0_3] : memref<312x128xf32, #tpu.memory_space<vmem>>, vector<128x128xf32>
    %c160 = arith.constant 160 : index
    %c0_4 = arith.constant 0 : index
    %3 = vector.load %arg1[%c160, %c0_4] : memref<312x128xf32, #tpu.memory_space<vmem>>, vector<128x32xf32>
    %c288 = arith.constant 288 : index
    %c0_5 = arith.constant 0 : index
    %4 = vector.load %arg1[%c288, %c0_5] : memref<312x128xf32, #tpu.memory_space<vmem>>, vector<1x32xf32>
    %c289 = arith.constant 289 : index
    %c0_6 = arith.constant 0 : index
    %5 = vector.load %arg1[%c289, %c0_6] : memref<312x128xf32, #tpu.memory_space<vmem>>, vector<1x32xf32>
    %cst = arith.constant dense<0.000000e+00> : vector<32xf32>
    %6 = vector.multi_reduction <add>, %0, %cst [1] : vector<32x32xf32> to vector<32xf32>
    %7 = vector.shape_cast %6 : vector<32xf32> to vector<32x1xf32>
    %cst_7 = arith.constant 3.200000e+01 : f32
    %8 = vector.broadcast %cst_7 : f32 to vector<32x1xf32>
    %9 = arith.divf %7, %8 : vector<32x1xf32>
    %10 = arith.mulf %0, %0 : vector<32x32xf32>
    %cst_8 = arith.constant dense<0.000000e+00> : vector<32xf32>
    %11 = vector.multi_reduction <add>, %10, %cst_8 [1] : vector<32x32xf32> to vector<32xf32>
    %12 = vector.shape_cast %11 : vector<32xf32> to vector<32x1xf32>
    %cst_9 = arith.constant 3.200000e+01 : f32
    %13 = vector.broadcast %cst_9 : f32 to vector<32x1xf32>
    %14 = arith.divf %12, %13 : vector<32x1xf32>
    %15 = arith.mulf %9, %9 : vector<32x1xf32>
    %16 = arith.subf %14, %15 : vector<32x1xf32>
    %17 = vector.broadcast %9 : vector<32x1xf32> to vector<32x32xf32>
    %18 = arith.subf %0, %17 : vector<32x32xf32>
    %cst_10 = arith.constant 9.99999996E-13 : f32
    %19 = vector.broadcast %cst_10 : f32 to vector<32x1xf32>
    %20 = arith.addf %16, %19 : vector<32x1xf32>
    %21 = math.rsqrt %20 : vector<32x1xf32>
    %22 = vector.broadcast %21 : vector<32x1xf32> to vector<32x32xf32>
    %23 = arith.mulf %18, %22 : vector<32x32xf32>
    %24 = vector.broadcast %4 : vector<1x32xf32> to vector<32x32xf32>
    %25 = arith.mulf %23, %24 : vector<32x32xf32>
    %26 = vector.broadcast %5 : vector<1x32xf32> to vector<32x32xf32>
    %27 = arith.addf %25, %26 : vector<32x32xf32>
    %28 = arith.truncf %27 : vector<32x32xf32> to vector<32x32xbf16>
    %c0_11 = arith.constant 0 : index
    %c0_12 = arith.constant 0 : index
    %29 = vector.load %arg2[%c0_11, %c0_12] : memref<512x128xbf16, #tpu.memory_space<vmem>>, vector<32x128xbf16>
    %cst_13 = arith.constant dense<0.000000e+00> : vector<32x128xf32>
    %30 = tpu.matmul %28, %29, %cst_13 {dimension_numbers = #tpu.dot_dimension_numbers<[1], [0], [0], [1], [0, 0, 1, 1], [], []>} : vector<32x32xbf16>, vector<32x128xbf16>, vector<32x128xf32> -> vector<32x128xf32>
    %c290 = arith.constant 290 : index
    %c0_14 = arith.constant 0 : index
    %31 = vector.load %arg1[%c290, %c0_14] : memref<312x128xf32, #tpu.memory_space<vmem>>, vector<1x128xf32>
    %32 = vector.broadcast %31 : vector<1x128xf32> to vector<32x128xf32>
    %33 = arith.addf %30, %32 : vector<32x128xf32>
    %34 = vector.extract_strided_slice %33 {offsets = [0, 0], sizes = [32, 8], strides = [1, 1]} : vector<32x128xf32> to vector<32x8xf32>
    %35 = arith.truncf %34 : vector<32x8xf32> to vector<32x8xbf16>
    %36 = vector.extract_strided_slice %33 {offsets = [0, 32], sizes = [32, 8], strides = [1, 1]} : vector<32x128xf32> to vector<32x8xf32>
    %37 = arith.truncf %36 : vector<32x8xf32> to vector<32x8xbf16>
    %cst_15 = arith.constant dense<0.000000e+00> : vector<32x32xf32>
    %38 = tpu.matmul %35, %37, %cst_15 {dimension_numbers = #tpu.dot_dimension_numbers<[1], [1], [0], [0], [0, 0, 1, 0], [], []>} : vector<32x8xbf16>, vector<32x8xbf16>, vector<32x32xf32> -> vector<32x32xf32>
    %c0_16 = arith.constant 0 : index
    %c0_17 = arith.constant 0 : index
    %39 = vector.load %arg4[%c0_16, %c0_17] : memref<32x128xf32, #tpu.memory_space<vmem>>, vector<32x32xf32>
    tpu.vector_store %arg4[%c0_16, %c0_17], %38 {strides = array<i32>} : memref<32x128xf32, #tpu.memory_space<vmem>>, vector<32x32xf32>,
    %40 = vector.extract_strided_slice %33 {offsets = [0, 8], sizes = [32, 8], strides = [1, 1]} : vector<32x128xf32> to vector<32x8xf32>
    %41 = arith.truncf %40 : vector<32x8xf32> to vector<32x8xbf16>
    %42 = vector.extract_strided_slice %33 {offsets = [0, 40], sizes = [32, 8], strides = [1, 1]} : vector<32x128xf32> to vector<32x8xf32>
    %43 = arith.truncf %42 : vector<32x8xf32> to vector<32x8xbf16>
    %cst_18 = arith.constant dense<0.000000e+00> : vector<32x32xf32>
    %44 = tpu.matmul %41, %43, %cst_18 {dimension_numbers = #tpu.dot_dimension_numbers<[1], [1], [0], [0], [0, 0, 1, 0], [], []>} : vector<32x8xbf16>, vector<32x8xbf16>, vector<32x32xf32> -> vector<32x32xf32>
    %c0_19 = arith.constant 0 : index
    %c32_20 = arith.constant 32 : index
    %45 = vector.load %arg4[%c0_19, %c32_20] : memref<32x128xf32, #tpu.memory_space<vmem>>, vector<32x32xf32>
    tpu.vector_store %arg4[%c0_19, %c32_20], %44 {strides = array<i32>} : memref<32x128xf32, #tpu.memory_space<vmem>>, vector<32x32xf32>,
    %46 = vector.extract_strided_slice %33 {offsets = [0, 16], sizes = [32, 8], strides = [1, 1]} : vector<32x128xf32> to vector<32x8xf32>
    %47 = arith.truncf %46 : vector<32x8xf32> to vector<32x8xbf16>
    %48 = vector.extract_strided_slice %33 {offsets = [0, 48], sizes = [32, 8], strides = [1, 1]} : vector<32x128xf32> to vector<32x8xf32>
    %49 = arith.truncf %48 : vector<32x8xf32> to vector<32x8xbf16>
    %cst_21 = arith.constant dense<0.000000e+00> : vector<32x32xf32>
    %50 = tpu.matmul %47, %49, %cst_21 {dimension_numbers = #tpu.dot_dimension_numbers<[1], [1], [0], [0], [0, 0, 1, 0], [], []>} : vector<32x8xbf16>, vector<32x8xbf16>, vector<32x32xf32> -> vector<32x32xf32>
    %c0_22 = arith.constant 0 : index
    %c64 = arith.constant 64 : index
    %51 = vector.load %arg4[%c0_22, %c64] : memref<32x128xf32, #tpu.memory_space<vmem>>, vector<32x32xf32>
    tpu.vector_store %arg4[%c0_22, %c64], %50 {strides = array<i32>} : memref<32x128xf32, #tpu.memory_space<vmem>>, vector<32x32xf32>,
    %52 = vector.extract_strided_slice %33 {offsets = [0, 24], sizes = [32, 8], strides = [1, 1]} : vector<32x128xf32> to vector<32x8xf32>
    %53 = arith.truncf %52 : vector<32x8xf32> to vector<32x8xbf16>
    %54 = vector.extract_strided_slice %33 {offsets = [0, 56], sizes = [32, 8], strides = [1, 1]} : vector<32x128xf32> to vector<32x8xf32>
    %55 = arith.truncf %54 : vector<32x8xf32> to vector<32x8xbf16>
    %cst_23 = arith.constant dense<0.000000e+00> : vector<32x32xf32>
    %56 = tpu.matmul %53, %55, %cst_23 {dimension_numbers = #tpu.dot_dimension_numbers<[1], [1], [0], [0], [0, 0, 1, 0], [], []>} : vector<32x8xbf16>, vector<32x8xbf16>, vector<32x32xf32> -> vector<32x32xf32>
    %c0_24 = arith.constant 0 : index
    %c96 = arith.constant 96 : index
    %57 = vector.load %arg4[%c0_24, %c96] : memref<32x128xf32, #tpu.memory_space<vmem>>, vector<32x32xf32>
    tpu.vector_store %arg4[%c0_24, %c96], %56 {strides = array<i32>} : memref<32x128xf32, #tpu.memory_space<vmem>>, vector<32x32xf32>,
    %c0_25 = arith.constant 0 : index
    %c0_26 = arith.constant 0 : index
    %58 = vector.load %arg4[%c0_25, %c0_26] : memref<32x128xf32, #tpu.memory_space<vmem>>, vector<32x128xf32>
    %59 = arith.addf %58, %1 : vector<32x128xf32>
    %60 = math.exp %59 : vector<32x128xf32>
    %cst_27 = arith.constant dense<0.000000e+00> : vector<32x128xf32>
    %61 = tpu.matmul %60, %2, %cst_27 {dimension_numbers = #tpu.dot_dimension_numbers<[1], [0], [0], [1], [0, 0, 1, 1], [], []>} : vector<32x128xf32>, vector<128x128xf32>, vector<32x128xf32> -> vector<32x128xf32>
    %62 = tpu.reciprocal %61 {approx = true} : vector<32x128xf32> -> vector<32x128xf32>
    %63 = arith.mulf %60, %62 : vector<32x128xf32>
    %64 = vector.extract_strided_slice %33 {offsets = [0, 64], sizes = [32, 32], strides = [1, 1]} : vector<32x128xf32> to vector<32x32xf32>
    %65 = tpu.concatenate %64, %64, %64, %64 in 0 : vector<32x32xf32>, vector<32x32xf32>, vector<32x32xf32>, vector<32x32xf32> -> vector<128x32xf32>
    %66 = arith.mulf %65, %3 : vector<128x32xf32>
    %67 = arith.truncf %66 : vector<128x32xf32> to vector<128x32xbf16>
    %68 = arith.truncf %63 : vector<32x128xf32> to vector<32x128xbf16>
    %cst_28 = arith.constant dense<0.000000e+00> : vector<32x32xf32>
    %69 = tpu.matmul %68, %67, %cst_28 {dimension_numbers = #tpu.dot_dimension_numbers<[1], [0], [0], [1], [0, 0, 1, 1], [], []>} : vector<32x128xbf16>, vector<128x32xbf16>, vector<32x32xf32> -> vector<32x32xf32>
    %70 = arith.truncf %69 : vector<32x32xf32> to vector<32x32xbf16>
    %c32_29 = arith.constant 32 : index
    %c0_30 = arith.constant 0 : index
    %71 = vector.load %arg2[%c32_29, %c0_30] : memref<512x128xbf16, #tpu.memory_space<vmem>>, vector<32x32xbf16>
    %cst_31 = arith.constant dense<0.000000e+00> : vector<32x32xf32>
    %72 = tpu.matmul %70, %71, %cst_31 {dimension_numbers = #tpu.dot_dimension_numbers<[1], [0], [0], [1], [0, 0, 1, 1], [], []>} : vector<32x32xbf16>, vector<32x32xbf16>, vector<32x32xf32> -> vector<32x32xf32>
    %73 = arith.addf %0, %72 : vector<32x32xf32>
    %c291 = arith.constant 291 : index
    %c0_32 = arith.constant 0 : index
    %74 = vector.load %arg1[%c291, %c0_32] : memref<312x128xf32, #tpu.memory_space<vmem>>, vector<1x32xf32>
    %75 = vector.broadcast %74 : vector<1x32xf32> to vector<32x32xf32>
    %76 = arith.addf %73, %75 : vector<32x32xf32>
    %c292 = arith.constant 292 : index
    %c0_33 = arith.constant 0 : index
    %77 = vector.load %arg1[%c292, %c0_33] : memref<312x128xf32, #tpu.memory_space<vmem>>, vector<1x32xf32>
    %c293 = arith.constant 293 : index
    %c0_34 = arith.constant 0 : index
    %78 = vector.load %arg1[%c293, %c0_34] : memref<312x128xf32, #tpu.memory_space<vmem>>, vector<1x32xf32>
    %cst_35 = arith.constant dense<0.000000e+00> : vector<32xf32>
    %79 = vector.multi_reduction <add>, %76, %cst_35 [1] : vector<32x32xf32> to vector<32xf32>
    %80 = vector.shape_cast %79 : vector<32xf32> to vector<32x1xf32>
    %cst_36 = arith.constant 3.200000e+01 : f32
    %81 = vector.broadcast %cst_36 : f32 to vector<32x1xf32>
    %82 = arith.divf %80, %81 : vector<32x1xf32>
    %83 = arith.mulf %76, %76 : vector<32x32xf32>
    %cst_37 = arith.constant dense<0.000000e+00> : vector<32xf32>
    %84 = vector.multi_reduction <add>, %83, %cst_37 [1] : vector<32x32xf32> to vector<32xf32>
    %85 = vector.shape_cast %84 : vector<32xf32> to vector<32x1xf32>
    %cst_38 = arith.constant 3.200000e+01 : f32
    %86 = vector.broadcast %cst_38 : f32 to vector<32x1xf32>
    %87 = arith.divf %85, %86 : vector<32x1xf32>
    %88 = arith.mulf %82, %82 : vector<32x1xf32>
    %89 = arith.subf %87, %88 : vector<32x1xf32>
    %90 = vector.broadcast %82 : vector<32x1xf32> to vector<32x32xf32>
    %91 = arith.subf %76, %90 : vector<32x32xf32>
    %cst_39 = arith.constant 9.99999996E-13 : f32
    %92 = vector.broadcast %cst_39 : f32 to vector<32x1xf32>
    %93 = arith.addf %89, %92 : vector<32x1xf32>
    %94 = math.rsqrt %93 : vector<32x1xf32>
    %95 = vector.broadcast %94 : vector<32x1xf32> to vector<32x32xf32>
    %96 = arith.mulf %91, %95 : vector<32x32xf32>
    %97 = vector.broadcast %77 : vector<1x32xf32> to vector<32x32xf32>
    %98 = arith.mulf %96, %97 : vector<32x32xf32>
    %99 = vector.broadcast %78 : vector<1x32xf32> to vector<32x32xf32>
    %100 = arith.addf %98, %99 : vector<32x32xf32>
    %101 = arith.truncf %100 : vector<32x32xf32> to vector<32x32xbf16>
    %c64_40 = arith.constant 64 : index
    %c0_41 = arith.constant 0 : index
    %102 = vector.load %arg2[%c64_40, %c0_41] : memref<512x128xbf16, #tpu.memory_space<vmem>>, vector<32x128xbf16>
    %cst_42 = arith.constant dense<0.000000e+00> : vector<32x128xf32>
    %103 = tpu.matmul %101, %102, %cst_42 {dimension_numbers = #tpu.dot_dimension_numbers<[1], [0], [0], [1], [0, 0, 1, 1], [], []>} : vector<32x32xbf16>, vector<32x128xbf16>, vector<32x128xf32> -> vector<32x128xf32>
    %c294 = arith.constant 294 : index
    %c0_43 = arith.constant 0 : index
    %104 = vector.load %arg1[%c294, %c0_43] : memref<312x128xf32, #tpu.memory_space<vmem>>, vector<1x128xf32>
    %105 = vector.broadcast %104 : vector<1x128xf32> to vector<32x128xf32>
    %106 = arith.addf %103, %105 : vector<32x128xf32>
    %cst_44 = arith.constant 5.000000e-01 : f32
    %107 = vector.broadcast %cst_44 : f32 to vector<32x128xf32>
    %108 = arith.mulf %107, %106 : vector<32x128xf32>
    %cst_45 = arith.constant 4.471500e-02 : f32
    %109 = vector.broadcast %cst_45 : f32 to vector<32x128xf32>
    %110 = arith.mulf %109, %106 : vector<32x128xf32>
    %111 = arith.mulf %110, %106 : vector<32x128xf32>
    %112 = arith.mulf %111, %106 : vector<32x128xf32>
    %113 = arith.addf %106, %112 : vector<32x128xf32>
    %cst_46 = arith.constant 0.797884583 : f32
    %114 = vector.broadcast %cst_46 : f32 to vector<32x128xf32>
    %115 = arith.mulf %114, %113 : vector<32x128xf32>
    %116 = math.tanh %115 : vector<32x128xf32>
    %cst_47 = arith.constant 1.000000e+00 : f32
    %117 = vector.broadcast %cst_47 : f32 to vector<32x128xf32>
    %118 = arith.addf %117, %116 : vector<32x128xf32>
    %119 = arith.mulf %108, %118 : vector<32x128xf32>
    %120 = arith.truncf %119 : vector<32x128xf32> to vector<32x128xbf16>
    %c96_48 = arith.constant 96 : index
    %c0_49 = arith.constant 0 : index
    %121 = vector.load %arg2[%c96_48, %c0_49] : memref<512x128xbf16, #tpu.memory_space<vmem>>, vector<128x32xbf16>
    %cst_50 = arith.constant dense<0.000000e+00> : vector<32x32xf32>
    %122 = tpu.matmul %120, %121, %cst_50 {dimension_numbers = #tpu.dot_dimension_numbers<[1], [0], [0], [1], [0, 0, 1, 1], [], []>} : vector<32x128xbf16>, vector<128x32xbf16>, vector<32x32xf32> -> vector<32x32xf32>
    %123 = arith.addf %76, %122 : vector<32x32xf32>
    %c295 = arith.constant 295 : index
    %c0_51 = arith.constant 0 : index
    %124 = vector.load %arg1[%c295, %c0_51] : memref<312x128xf32, #tpu.memory_space<vmem>>, vector<1x32xf32>
    %125 = vector.broadcast %124 : vector<1x32xf32> to vector<32x32xf32>
    %126 = arith.addf %123, %125 : vector<32x32xf32>
    %c296 = arith.constant 296 : index
    %c0_52 = arith.constant 0 : index
    %127 = vector.load %arg1[%c296, %c0_52] : memref<312x128xf32, #tpu.memory_space<vmem>>, vector<1x32xf32>
    %c297 = arith.constant 297 : index
    %c0_53 = arith.constant 0 : index
    %128 = vector.load %arg1[%c297, %c0_53] : memref<312x128xf32, #tpu.memory_space<vmem>>, vector<1x32xf32>
    %cst_54 = arith.constant dense<0.000000e+00> : vector<32xf32>
    %129 = vector.multi_reduction <add>, %126, %cst_54 [1] : vector<32x32xf32> to vector<32xf32>
    %130 = vector.shape_cast %129 : vector<32xf32> to vector<32x1xf32>
    %cst_55 = arith.constant 3.200000e+01 : f32
    %131 = vector.broadcast %cst_55 : f32 to vector<32x1xf32>
    %132 = arith.divf %130, %131 : vector<32x1xf32>
    %133 = arith.mulf %126, %126 : vector<32x32xf32>
    %cst_56 = arith.constant dense<0.000000e+00> : vector<32xf32>
    %134 = vector.multi_reduction <add>, %133, %cst_56 [1] : vector<32x32xf32> to vector<32xf32>
    %135 = vector.shape_cast %134 : vector<32xf32> to vector<32x1xf32>
    %cst_57 = arith.constant 3.200000e+01 : f32
    %136 = vector.broadcast %cst_57 : f32 to vector<32x1xf32>
    %137 = arith.divf %135, %136 : vector<32x1xf32>
    %138 = arith.mulf %132, %132 : vector<32x1xf32>
    %139 = arith.subf %137, %138 : vector<32x1xf32>
    %140 = vector.broadcast %132 : vector<32x1xf32> to vector<32x32xf32>
    %141 = arith.subf %126, %140 : vector<32x32xf32>
    %cst_58 = arith.constant 9.99999996E-13 : f32
    %142 = vector.broadcast %cst_58 : f32 to vector<32x1xf32>
    %143 = arith.addf %139, %142 : vector<32x1xf32>
    %144 = math.rsqrt %143 : vector<32x1xf32>
    %145 = vector.broadcast %144 : vector<32x1xf32> to vector<32x32xf32>
    %146 = arith.mulf %141, %145 : vector<32x32xf32>
    %147 = vector.broadcast %127 : vector<1x32xf32> to vector<32x32xf32>
    %148 = arith.mulf %146, %147 : vector<32x32xf32>
    %149 = vector.broadcast %128 : vector<1x32xf32> to vector<32x32xf32>
    %150 = arith.addf %148, %149 : vector<32x32xf32>
    %151 = arith.truncf %150 : vector<32x32xf32> to vector<32x32xbf16>
    %c224 = arith.constant 224 : index
    %c0_59 = arith.constant 0 : index
    %152 = vector.load %arg2[%c224, %c0_59] : memref<512x128xbf16, #tpu.memory_space<vmem>>, vector<32x128xbf16>
    %cst_60 = arith.constant dense<0.000000e+00> : vector<32x128xf32>
    %153 = tpu.matmul %151, %152, %cst_60 {dimension_numbers = #tpu.dot_dimension_numbers<[1], [0], [0], [1], [0, 0, 1, 1], [], []>} : vector<32x32xbf16>, vector<32x128xbf16>, vector<32x128xf32> -> vector<32x128xf32>
    %c298 = arith.constant 298 : index
    %c0_61 = arith.constant 0 : index
    %154 = vector.load %arg1[%c298, %c0_61] : memref<312x128xf32, #tpu.memory_space<vmem>>, vector<1x128xf32>
    %155 = vector.broadcast %154 : vector<1x128xf32> to vector<32x128xf32>
    %156 = arith.addf %153, %155 : vector<32x128xf32>
    %157 = vector.extract_strided_slice %156 {offsets = [0, 0], sizes = [32, 8], strides = [1, 1]} : vector<32x128xf32> to vector<32x8xf32>
    %158 = arith.truncf %157 : vector<32x8xf32> to vector<32x8xbf16>
    %159 = vector.extract_strided_slice %156 {offsets = [0, 32], sizes = [32, 8], strides = [1, 1]} : vector<32x128xf32> to vector<32x8xf32>
    %160 = arith.truncf %159 : vector<32x8xf32> to vector<32x8xbf16>
    %cst_62 = arith.constant dense<0.000000e+00> : vector<32x32xf32>
    %161 = tpu.matmul %158, %160, %cst_62 {dimension_numbers = #tpu.dot_dimension_numbers<[1], [1], [0], [0], [0, 0, 1, 0], [], []>} : vector<32x8xbf16>, vector<32x8xbf16>, vector<32x32xf32> -> vector<32x32xf32>
    %c0_63 = arith.constant 0 : index
    %c0_64 = arith.constant 0 : index
    %162 = vector.load %arg4[%c0_63, %c0_64] : memref<32x128xf32, #tpu.memory_space<vmem>>, vector<32x32xf32>
    tpu.vector_store %arg4[%c0_63, %c0_64], %161 {strides = array<i32>} : memref<32x128xf32, #tpu.memory_space<vmem>>, vector<32x32xf32>,
    %163 = vector.extract_strided_slice %156 {offsets = [0, 8], sizes = [32, 8], strides = [1, 1]} : vector<32x128xf32> to vector<32x8xf32>
    %164 = arith.truncf %163 : vector<32x8xf32> to vector<32x8xbf16>
    %165 = vector.extract_strided_slice %156 {offsets = [0, 40], sizes = [32, 8], strides = [1, 1]} : vector<32x128xf32> to vector<32x8xf32>
    %166 = arith.truncf %165 : vector<32x8xf32> to vector<32x8xbf16>
    %cst_65 = arith.constant dense<0.000000e+00> : vector<32x32xf32>
    %167 = tpu.matmul %164, %166, %cst_65 {dimension_numbers = #tpu.dot_dimension_numbers<[1], [1], [0], [0], [0, 0, 1, 0], [], []>} : vector<32x8xbf16>, vector<32x8xbf16>, vector<32x32xf32> -> vector<32x32xf32>
    %c0_66 = arith.constant 0 : index
    %c32_67 = arith.constant 32 : index
    %168 = vector.load %arg4[%c0_66, %c32_67] : memref<32x128xf32, #tpu.memory_space<vmem>>, vector<32x32xf32>
    tpu.vector_store %arg4[%c0_66, %c32_67], %167 {strides = array<i32>} : memref<32x128xf32, #tpu.memory_space<vmem>>, vector<32x32xf32>,
    %169 = vector.extract_strided_slice %156 {offsets = [0, 16], sizes = [32, 8], strides = [1, 1]} : vector<32x128xf32> to vector<32x8xf32>
    %170 = arith.truncf %169 : vector<32x8xf32> to vector<32x8xbf16>
    %171 = vector.extract_strided_slice %156 {offsets = [0, 48], sizes = [32, 8], strides = [1, 1]} : vector<32x128xf32> to vector<32x8xf32>
    %172 = arith.truncf %171 : vector<32x8xf32> to vector<32x8xbf16>
    %cst_68 = arith.constant dense<0.000000e+00> : vector<32x32xf32>
    %173 = tpu.matmul %170, %172, %cst_68 {dimension_numbers = #tpu.dot_dimension_numbers<[1], [1], [0], [0], [0, 0, 1, 0], [], []>} : vector<32x8xbf16>, vector<32x8xbf16>, vector<32x32xf32> -> vector<32x32xf32>
    %c0_69 = arith.constant 0 : index
    %c64_70 = arith.constant 64 : index
    %174 = vector.load %arg4[%c0_69, %c64_70] : memref<32x128xf32, #tpu.memory_space<vmem>>, vector<32x32xf32>
    tpu.vector_store %arg4[%c0_69, %c64_70], %173 {strides = array<i32>} : memref<32x128xf32, #tpu.memory_space<vmem>>, vector<32x32xf32>,
    %175 = vector.extract_strided_slice %156 {offsets = [0, 24], sizes = [32, 8], strides = [1, 1]} : vector<32x128xf32> to vector<32x8xf32>
    %176 = arith.truncf %175 : vector<32x8xf32> to vector<32x8xbf16>
    %177 = vector.extract_strided_slice %156 {offsets = [0, 56], sizes = [32, 8], strides = [1, 1]} : vector<32x128xf32> to vector<32x8xf32>
    %178 = arith.truncf %177 : vector<32x8xf32> to vector<32x8xbf16>
    %cst_71 = arith.constant dense<0.000000e+00> : vector<32x32xf32>
    %179 = tpu.matmul %176, %178, %cst_71 {dimension_numbers = #tpu.dot_dimension_numbers<[1], [1], [0], [0], [0, 0, 1, 0], [], []>} : vector<32x8xbf16>, vector<32x8xbf16>, vector<32x32xf32> -> vector<32x32xf32>
    %c0_72 = arith.constant 0 : index
    %c96_73 = arith.constant 96 : index
    %180 = vector.load %arg4[%c0_72, %c96_73] : memref<32x128xf32, #tpu.memory_space<vmem>>, vector<32x32xf32>
    tpu.vector_store %arg4[%c0_72, %c96_73], %179 {strides = array<i32>} : memref<32x128xf32, #tpu.memory_space<vmem>>, vector<32x32xf32>,
    %c0_74 = arith.constant 0 : index
    %c0_75 = arith.constant 0 : index
    %181 = vector.load %arg4[%c0_74, %c0_75] : memref<32x128xf32, #tpu.memory_space<vmem>>, vector<32x128xf32>
    %182 = arith.addf %181, %1 : vector<32x128xf32>
    %183 = math.exp %182 : vector<32x128xf32>
    %cst_76 = arith.constant dense<0.000000e+00> : vector<32x128xf32>
    %184 = tpu.matmul %183, %2, %cst_76 {dimension_numbers = #tpu.dot_dimension_numbers<[1], [0], [0], [1], [0, 0, 1, 1], [], []>} : vector<32x128xf32>, vector<128x128xf32>, vector<32x128xf32> -> vector<32x128xf32>
    %185 = tpu.reciprocal %184 {approx = true} : vector<32x128xf32> -> vector<32x128xf32>
    %186 = arith.mulf %183, %185 : vector<32x128xf32>
    %187 = vector.extract_strided_slice %156 {offsets = [0, 64], sizes = [32, 32], strides = [1, 1]} : vector<32x128xf32> to vector<32x32xf32>
    %188 = tpu.concatenate %187, %187, %187, %187 in 0 : vector<32x32xf32>, vector<32x32xf32>, vector<32x32xf32>, vector<32x32xf32> -> vector<128x32xf32>
    %189 = arith.mulf %188, %3 : vector<128x32xf32>
    %190 = arith.truncf %189 : vector<128x32xf32> to vector<128x32xbf16>
    %191 = arith.truncf %186 : vector<32x128xf32> to vector<32x128xbf16>
    %cst_77 = arith.constant dense<0.000000e+00> : vector<32x32xf32>
    %192 = tpu.matmul %191, %190, %cst_77 {dimension_numbers = #tpu.dot_dimension_numbers<[1], [0], [0], [1], [0, 0, 1, 1], [], []>} : vector<32x128xbf16>, vector<128x32xbf16>, vector<32x32xf32> -> vector<32x32xf32>
    %193 = arith.truncf %192 : vector<32x32xf32> to vector<32x32xbf16>
    %c256 = arith.constant 256 : index
    %c0_78 = arith.constant 0 : index
    %194 = vector.load %arg2[%c256, %c0_78] : memref<512x128xbf16, #tpu.memory_space<vmem>>, vector<32x32xbf16>
    %cst_79 = arith.constant dense<0.000000e+00> : vector<32x32xf32>
    %195 = tpu.matmul %193, %194, %cst_79 {dimension_numbers = #tpu.dot_dimension_numbers<[1], [0], [0], [1], [0, 0, 1, 1], [], []>} : vector<32x32xbf16>, vector<32x32xbf16>, vector<32x32xf32> -> vector<32x32xf32>
    %196 = arith.addf %126, %195 : vector<32x32xf32>
    %c299 = arith.constant 299 : index
    %c0_80 = arith.constant 0 : index
    %197 = vector.load %arg1[%c299, %c0_80] : memref<312x128xf32, #tpu.memory_space<vmem>>, vector<1x32xf32>
    %198 = vector.broadcast %197 : vector<1x32xf32> to vector<32x32xf32>
    %199 = arith.addf %196, %198 : vector<32x32xf32>
    %c300 = arith.constant 300 : index
    %c0_81 = arith.constant 0 : index
    %200 = vector.load %arg1[%c300, %c0_81] : memref<312x128xf32, #tpu.memory_space<vmem>>, vector<1x32xf32>
    %c301 = arith.constant 301 : index
    %c0_82 = arith.constant 0 : index
    %201 = vector.load %arg1[%c301, %c0_82] : memref<312x128xf32, #tpu.memory_space<vmem>>, vector<1x32xf32>
    %cst_83 = arith.constant dense<0.000000e+00> : vector<32xf32>
    %202 = vector.multi_reduction <add>, %199, %cst_83 [1] : vector<32x32xf32> to vector<32xf32>
    %203 = vector.shape_cast %202 : vector<32xf32> to vector<32x1xf32>
    %cst_84 = arith.constant 3.200000e+01 : f32
    %204 = vector.broadcast %cst_84 : f32 to vector<32x1xf32>
    %205 = arith.divf %203, %204 : vector<32x1xf32>
    %206 = arith.mulf %199, %199 : vector<32x32xf32>
    %cst_85 = arith.constant dense<0.000000e+00> : vector<32xf32>
    %207 = vector.multi_reduction <add>, %206, %cst_85 [1] : vector<32x32xf32> to vector<32xf32>
    %208 = vector.shape_cast %207 : vector<32xf32> to vector<32x1xf32>
    %cst_86 = arith.constant 3.200000e+01 : f32
    %209 = vector.broadcast %cst_86 : f32 to vector<32x1xf32>
    %210 = arith.divf %208, %209 : vector<32x1xf32>
    %211 = arith.mulf %205, %205 : vector<32x1xf32>
    %212 = arith.subf %210, %211 : vector<32x1xf32>
    %213 = vector.broadcast %205 : vector<32x1xf32> to vector<32x32xf32>
    %214 = arith.subf %199, %213 : vector<32x32xf32>
    %cst_87 = arith.constant 9.99999996E-13 : f32
    %215 = vector.broadcast %cst_87 : f32 to vector<32x1xf32>
    %216 = arith.addf %212, %215 : vector<32x1xf32>
    %217 = math.rsqrt %216 : vector<32x1xf32>
    %218 = vector.broadcast %217 : vector<32x1xf32> to vector<32x32xf32>
    %219 = arith.mulf %214, %218 : vector<32x32xf32>
    %220 = vector.broadcast %200 : vector<1x32xf32> to vector<32x32xf32>
    %221 = arith.mulf %219, %220 : vector<32x32xf32>
    %222 = vector.broadcast %201 : vector<1x32xf32> to vector<32x32xf32>
    %223 = arith.addf %221, %222 : vector<32x32xf32>
    %224 = arith.truncf %223 : vector<32x32xf32> to vector<32x32xbf16>
    %c288_88 = arith.constant 288 : index
    %c0_89 = arith.constant 0 : index
    %225 = vector.load %arg2[%c288_88, %c0_89] : memref<512x128xbf16, #tpu.memory_space<vmem>>, vector<32x128xbf16>
    %cst_90 = arith.constant dense<0.000000e+00> : vector<32x128xf32>
    %226 = tpu.matmul %224, %225, %cst_90 {dimension_numbers = #tpu.dot_dimension_numbers<[1], [0], [0], [1], [0, 0, 1, 1], [], []>} : vector<32x32xbf16>, vector<32x128xbf16>, vector<32x128xf32> -> vector<32x128xf32>
    %c302 = arith.constant 302 : index
    %c0_91 = arith.constant 0 : index
    %227 = vector.load %arg1[%c302, %c0_91] : memref<312x128xf32, #tpu.memory_space<vmem>>, vector<1x128xf32>
    %228 = vector.broadcast %227 : vector<1x128xf32> to vector<32x128xf32>
    %229 = arith.addf %226, %228 : vector<32x128xf32>
    %cst_92 = arith.constant 5.000000e-01 : f32
    %230 = vector.broadcast %cst_92 : f32 to vector<32x128xf32>
    %231 = arith.mulf %230, %229 : vector<32x128xf32>
    %cst_93 = arith.constant 4.471500e-02 : f32
    %232 = vector.broadcast %cst_93 : f32 to vector<32x128xf32>
    %233 = arith.mulf %232, %229 : vector<32x128xf32>
    %234 = arith.mulf %233, %229 : vector<32x128xf32>
    %235 = arith.mulf %234, %229 : vector<32x128xf32>
    %236 = arith.addf %229, %235 : vector<32x128xf32>
    %cst_94 = arith.constant 0.797884583 : f32
    %237 = vector.broadcast %cst_94 : f32 to vector<32x128xf32>
    %238 = arith.mulf %237, %236 : vector<32x128xf32>
    %239 = math.tanh %238 : vector<32x128xf32>
    %cst_95 = arith.constant 1.000000e+00 : f32
    %240 = vector.broadcast %cst_95 : f32 to vector<32x128xf32>
    %241 = arith.addf %240, %239 : vector<32x128xf32>
    %242 = arith.mulf %231, %241 : vector<32x128xf32>
    %243 = arith.truncf %242 : vector<32x128xf32> to vector<32x128xbf16>
    %c320 = arith.constant 320 : index
    %c0_96 = arith.constant 0 : index
    %244 = vector.load %arg2[%c320, %c0_96] : memref<512x128xbf16, #tpu.memory_space<vmem>>, vector<128x32xbf16>
    %cst_97 = arith.constant dense<0.000000e+00> : vector<32x32xf32>
    %245 = tpu.matmul %243, %244, %cst_97 {dimension_numbers = #tpu.dot_dimension_numbers<[1], [0], [0], [1], [0, 0, 1, 1], [], []>} : vector<32x128xbf16>, vector<128x32xbf16>, vector<32x32xf32> -> vector<32x32xf32>
    %246 = arith.addf %199, %245 : vector<32x32xf32>
    %c303 = arith.constant 303 : index
    %c0_98 = arith.constant 0 : index
    %247 = vector.load %arg1[%c303, %c0_98] : memref<312x128xf32, #tpu.memory_space<vmem>>, vector<1x32xf32>
    %248 = vector.broadcast %247 : vector<1x32xf32> to vector<32x32xf32>
    %249 = arith.addf %246, %248 : vector<32x32xf32>
    %250 = vector.extract_strided_slice %249 {offsets = [0, 0], sizes = [8, 32], strides = [1, 1]} : vector<32x32xf32> to vector<8x32xf32>
    %251 = vector.extract_strided_slice %249 {offsets = [16, 0], sizes = [8, 32], strides = [1, 1]} : vector<32x32xf32> to vector<8x32xf32>
    %252 = tpu.concatenate %250, %251 in 0 : vector<8x32xf32>, vector<8x32xf32> -> vector<16x32xf32>
    %c304 = arith.constant 304 : index
    %c0_99 = arith.constant 0 : index
    %253 = vector.load %arg1[%c304, %c0_99] : memref<312x128xf32, #tpu.memory_space<vmem>>, vector<1x32xf32>
    %c305 = arith.constant 305 : index
    %c0_100 = arith.constant 0 : index
    %254 = vector.load %arg1[%c305, %c0_100] : memref<312x128xf32, #tpu.memory_space<vmem>>, vector<1x32xf32>
    %cst_101 = arith.constant dense<0.000000e+00> : vector<16xf32>
    %255 = vector.multi_reduction <add>, %252, %cst_101 [1] : vector<16x32xf32> to vector<16xf32>
    %256 = vector.shape_cast %255 : vector<16xf32> to vector<16x1xf32>
    %cst_102 = arith.constant 3.200000e+01 : f32
    %257 = vector.broadcast %cst_102 : f32 to vector<16x1xf32>
    %258 = arith.divf %256, %257 : vector<16x1xf32>
    %259 = arith.mulf %252, %252 : vector<16x32xf32>
    %cst_103 = arith.constant dense<0.000000e+00> : vector<16xf32>
    %260 = vector.multi_reduction <add>, %259, %cst_103 [1] : vector<16x32xf32> to vector<16xf32>
    %261 = vector.shape_cast %260 : vector<16xf32> to vector<16x1xf32>
    %cst_104 = arith.constant 3.200000e+01 : f32
    %262 = vector.broadcast %cst_104 : f32 to vector<16x1xf32>
    %263 = arith.divf %261, %262 : vector<16x1xf32>
    %264 = arith.mulf %258, %258 : vector<16x1xf32>
    %265 = arith.subf %263, %264 : vector<16x1xf32>
    %266 = vector.broadcast %258 : vector<16x1xf32> to vector<16x32xf32>
    %267 = arith.subf %252, %266 : vector<16x32xf32>
    %cst_105 = arith.constant 9.99999996E-13 : f32
    %268 = vector.broadcast %cst_105 : f32 to vector<16x1xf32>
    %269 = arith.addf %265, %268 : vector<16x1xf32>
    %270 = math.rsqrt %269 : vector<16x1xf32>
    %271 = vector.broadcast %270 : vector<16x1xf32> to vector<16x32xf32>
    %272 = arith.mulf %267, %271 : vector<16x32xf32>
    %273 = vector.broadcast %253 : vector<1x32xf32> to vector<16x32xf32>
    %274 = arith.mulf %272, %273 : vector<16x32xf32>
    %275 = vector.broadcast %254 : vector<1x32xf32> to vector<16x32xf32>
    %276 = arith.addf %274, %275 : vector<16x32xf32>
    %277 = arith.truncf %276 : vector<16x32xf32> to vector<16x32xbf16>
    %c448 = arith.constant 448 : index
    %c0_106 = arith.constant 0 : index
    %278 = vector.load %arg2[%c448, %c0_106] : memref<512x128xbf16, #tpu.memory_space<vmem>>, vector<32x32xbf16>
    %cst_107 = arith.constant dense<0.000000e+00> : vector<16x32xf32>
    %279 = tpu.matmul %277, %278, %cst_107 {dimension_numbers = #tpu.dot_dimension_numbers<[1], [0], [0], [1], [0, 0, 1, 1], [], []>} : vector<16x32xbf16>, vector<32x32xbf16>, vector<16x32xf32> -> vector<16x32xf32>
    %c306 = arith.constant 306 : index
    %c0_108 = arith.constant 0 : index
    %280 = vector.load %arg1[%c306, %c0_108] : memref<312x128xf32, #tpu.memory_space<vmem>>, vector<1x32xf32>
    %281 = vector.broadcast %280 : vector<1x32xf32> to vector<16x32xf32>
    %282 = arith.addf %279, %281 : vector<16x32xf32>
    %283 = math.tanh %282 : vector<16x32xf32>
    %284 = arith.truncf %283 : vector<16x32xf32> to vector<16x32xbf16>
    %c480 = arith.constant 480 : index
    %c0_109 = arith.constant 0 : index
    %285 = vector.load %arg2[%c480, %c0_109] : memref<512x128xbf16, #tpu.memory_space<vmem>>, vector<32x128xbf16>
    %cst_110 = arith.constant dense<0.000000e+00> : vector<16x128xf32>
    %286 = tpu.matmul %284, %285, %cst_110 {dimension_numbers = #tpu.dot_dimension_numbers<[1], [0], [0], [1], [0, 0, 1, 1], [], []>} : vector<16x32xbf16>, vector<32x128xbf16>, vector<16x128xf32> -> vector<16x128xf32>
    %c307 = arith.constant 307 : index
    %c0_111 = arith.constant 0 : index
    %287 = vector.load %arg1[%c307, %c0_111] : memref<312x128xf32, #tpu.memory_space<vmem>>, vector<1x128xf32>
    %288 = vector.broadcast %287 : vector<1x128xf32> to vector<16x128xf32>
    %289 = arith.addf %286, %288 : vector<16x128xf32>
    %c0_112 = arith.constant 0 : index
    %c0_113 = arith.constant 0 : index
    %290 = vector.load %arg3[%c0_112, %c0_113] : memref<16x128xf32, #tpu.memory_space<vmem>>, vector<16x128xf32>
    tpu.vector_store %arg3[%c0_112, %c0_113], %289 {strides = array<i32>} : memref<16x128xf32, #tpu.memory_space<vmem>>, vector<16x128xf32>,
    return
  }
}

</mosaic_0001>

<bundles_post_ra>
// kernel: custom_vilt_forward.1
= control target key start
LH: loop header
LB: loop body
LE: loop exit
PB: predicated region body
PF: predicated region fallthrough
CT: control target
= control target key end

     0   :  { %vm57_vm0 = vcmask 261120   ;;  %vm221_vm1 = vcmask 64512   ;;  %s3262_s29 = smov 88   ;;  %s3263_s30 = smov 96   ;;  %vm372_vm2 = vcmask 523520   ;;  %vm462_vm3 = vcmask 785920   ;;  %s4135_s0 = inlined_call_operand.vmem [shape: f32[32,32], index: 0, kind: input, shape index: {}]   ;;  %s4136_s2 = inlined_call_operand.vmem [shape: bf16[512,128], index: 2, kind: input, shape index: {}]   ;;  %s4137_s1 = inlined_call_operand.vmem [shape: f32[312,128], index: 1, kind: input, shape index: {}]   ;;  %s4138_s3 = inlined_call_operand.vmem [shape: f32[16,128], index: 3, kind: output, shape index: {}]  }
   0x1   :  { %v3296_v0 = vld [vmem:[%s4135_s0 + $0x10] sm:$0xff]  ;;  %v3301_v1 = vld [vmem:[%s4135_s0] sm:$0xff]  ;;  %v3306_v2 = vld [vmem:[%s4135_s0 + $0x18] sm:$0xff]  ;;  %s3264_s4 = smov 80   ;;  %s3265_s5 = smov 72   ;;  %vm552_vm4 = vcmask 1048320  }
   0x2   :  { %v64_v3 = vsel %vm57_vm0, %v3296_v0, 0.0  ;;  %v58_v4 = vsel %vm57_vm0, %v3301_v1, 0.0  ;;  %v3315_v5 = vld [vmem:[%s4135_s0 + $0x8] sm:$0xff]  ;;  %v67_v6 = vsel %vm57_vm0, %v3306_v2, 0.0  ;;  %v75_v9 = vmul.f32 %v3301_v1, %v3301_v1  ;;  %v3138_v16 = vld [vmem:[%s4136_s2] sm:$0xff]   ;;  %s3266_s6 = smov 120  }
   0x3   :  { %65 = vadd.xlane.f32.xlu1 %v64_v3  ;;  %59 = vadd.xlane.f32.xlu0 %v58_v4  ;;  %v61_v7 = vsel %vm57_vm0, %v3315_v5, 0.0  ;;  %v76_v8 = vmul.f32 %v3315_v5, %v3315_v5  ;;  %v78_v12 = vmul.f32 %v3306_v2, %v3306_v2  ;;  %v77_v13 = vmul.f32 %v3296_v0, %v3296_v0  ;;  %v3139_v17 = vld [vmem:[%s4136_s2 + $0x8] sm:$0xff]   ;;  %v2539_v49 = vld [vmem:[%s4137_s1 + $0x120] ss:$0 sm:$0xff]  ;;  %v2540_v52 = vld [vmem:[%s4137_s1 + $0x121] ss:$0 sm:$0xff] }
   0x4   :  { %v79_v11 = vsel %vm57_vm0, %v75_v9, 0.0  ;;  %2763 = vmatprep.subr.bf16.mxu1 %v3138_v16  ;;  %s3267_s7 = smov 112   ;;  %s3268_s8 = smov 104   ;;  %vm3272_vm5 = vmmov 0  }
   0x5   :  { %v82_v10 = vsel %vm57_vm0, %v76_v8, 0.0  ;;  %v88_v14 = vsel %vm57_vm0, %v78_v12, 0.0  ;;  %v85_v15 = vsel %vm57_vm0, %v77_v13, 0.0  ;;  %2764 = vmatpush3.bf16.msra.mxu1 %v3138_v16  ;;  %s3269_s9 = smov 32   ;;  %s3270_s25 = smov 64  }
   0x6   :  { %2765 = vmatprep.subr.bf16.mxu1 %v3139_v17 }
   0x7   :  { %68 = vadd.xlane.f32.xlu1 %v67_v6  ;;  %62 = vadd.xlane.f32.xlu0 %v61_v7 }
   0x9   :  { %2766 = vmatpush3.bf16.msra.mxu1 %v3139_v17 }
   0xb   :  { %83 = vadd.xlane.f32.xlu1 %v82_v10  ;;  %80 = vadd.xlane.f32.xlu0 %v79_v11  ;;  %v2541_v11 = vld [vmem:[%s4137_s1 + $0x122] ss:$0 sm:$0xff] }
   0xf   :  { %89 = vadd.xlane.f32.xlu1 %v88_v14  ;;  %86 = vadd.xlane.f32.xlu0 %v85_v15 }
  0x90   :  { %v66_v18 = vpop.xlane.xlu1 %65  ;;  %v60_v19 = vpop.xlane.xlu0 %59 }
  0x91   :  { %v71_v22 = vmul.f32 0.03125, %v60_v19  ;;  %v73_v24 = vmul.f32 0.03125, %v66_v18 }
  0x93   :  { %v95_v28 = vmul.f32 %v71_v22, %v71_v22  ;;  %v97_v34 = vmul.f32 %v73_v24, %v73_v24  ;;  %v103_v48 = vsub.f32 %v3301_v1, %v71_v22  ;;  %v105_v57 = vsub.f32 %v3296_v0, %v73_v24 }
  0x94   :  { %v69_v20 = vpop.xlane.xlu1 %68  ;;  %v63_v21 = vpop.xlane.xlu0 %62 }
  0x95   :  { %v72_v23 = vmul.f32 0.03125, %v63_v21  ;;  %v74_v25 = vmul.f32 0.03125, %v69_v20 }
  0x97   :  { %v96_v29 = vmul.f32 %v72_v23, %v72_v23  ;;  %v98_v35 = vmul.f32 %v74_v25, %v74_v25  ;;  %v104_v46 = vsub.f32 %v3315_v5, %v72_v23  ;;  %v106_v54 = vsub.f32 %v3306_v2, %v74_v25 }
  0x98   :  { %v84_v26 = vpop.xlane.xlu1 %83  ;;  %v81_v27 = vpop.xlane.xlu0 %80 }
  0x99   :  { %v92_v30 = vmul.f32 0.03125, %v84_v26  ;;  %v91_v31 = vmul.f32 0.03125, %v81_v27 }
  0x9b   :  { %v100_v32 = vsub.f32 %v92_v30, %v96_v29  ;;  %v99_v33 = vsub.f32 %v91_v31, %v95_v28 }
  0x9c   :  { %v90_v36 = vpop.xlane.xlu1 %89  ;;  %v87_v37 = vpop.xlane.xlu0 %86 }
  0x9d   :  { %v108_v38 = vadd.f32 1e-12, %v100_v32  ;;  %v107_v39 = vadd.f32 1e-12, %v99_v33  ;;  %v94_v40 = vmul.f32 0.03125, %v90_v36  ;;  %v93_v41 = vmul.f32 0.03125, %v87_v37 }
  0x9f   :  { %3170 = vrsqrt.f32 %v108_v38  ;;  %v102_v42 = vsub.f32 %v94_v40, %v98_v35  ;;  %v101_v43 = vsub.f32 %v93_v41, %v97_v34 }
  0xa0   :  { %3172 = vrsqrt.f32 %v107_v39 }
  0xa1   :  { %v110_v44 = vadd.f32 1e-12, %v102_v42  ;;  %v109_v45 = vadd.f32 1e-12, %v101_v43 }
  0xa3   :  { %3174 = vrsqrt.f32 %v110_v44 }
  0xa4   :  { %3176 = vrsqrt.f32 %v109_v45 }
  0xa9   :  { %v3171_v47 = vpop.eup %3170 }
  0xaa   :  { %v3173_v50 = vpop.eup %3172  ;;  %v116_v51 = vmul.f32 %v3171_v47, %v104_v46 }
  0xab   :  { %v115_v53 = vmul.f32 %v3173_v50, %v103_v48 }
  0xac   :  { %v124_v55 = vmul.f32 %v2539_v49, %v116_v51  ;;  %v23_v51 = vld [vmem:[%s4137_s1 + $0x20] sm:$0xff] }
  0xad   :  { %v3175_v56 = vpop.eup %3174  ;;  %v123_v58 = vmul.f32 %v2539_v49, %v115_v53 }
  0xae   :  { %v3177_v59 = vpop.eup %3176  ;;  %v132_v60 = vadd.f32 %v2540_v52, %v124_v55  ;;  %v118_v61 = vmul.f32 %v3175_v56, %v106_v54  ;;  %v25_v54 = vld [vmem:[%s4137_s1 + $0x30] sm:$0xff]  ;;  %v26_v55 = vld [vmem:[%s4137_s1 + $0x38] sm:$0xff] }
  0xaf   :  { %v131_v62 = vadd.f32 %v2540_v52, %v123_v58  ;;  %v117_v63 = vmul.f32 %v3177_v59, %v105_v57  ;;  %v3428_v56 = vpack.c.bf16 %v26_v55, %v25_v54  ;;  %v27_v57 = vld [vmem:[%s4137_s1 + $0x40] sm:$0xff]  ;;  %v28_v58 = vld [vmem:[%s4137_s1 + $0x48] sm:$0xff] }
  0xb0   :  { %v126_v3 = vmul.f32 %v2539_v49, %v118_v61  ;;  %v3438_v59 = vpack.c.bf16 %v28_v58, %v27_v57  ;;  %v30_v61 = vld [vmem:[%s4137_s1 + $0x58] sm:$0xff]  ;;  %v19_v57 = vld [vmem:[%s4137_s1] sm:$0xff]  ;;  %v20_v58 = vld [vmem:[%s4137_s1 + $0x8] sm:$0xff] }
  0xb1   :  { %v135_v4 = vpack.c.bf16 %v132_v60, %v131_v62  ;;  %v125_v6 = vmul.f32 %v2539_v49, %v117_v63  ;;  %v29_v60 = vld [vmem:[%s4137_s1 + $0x50] sm:$0xff] }
  0xb2   :  { %v134_v7 = vadd.f32 %v2540_v52, %v126_v3  ;;  %v3448_v63 = vpack.c.bf16 %v30_v61, %v29_v60 }
  0xb3   :  { %2767 = vmatprep.mubr.msk.bf16.mxu1 %vm57_vm0, %v135_v4  ;;  %v133_v8 = vadd.f32 %v2540_v52, %v125_v6  ;;  %v24_v52 = vld [vmem:[%s4137_s1 + $0x28] sm:$0xff] }
  0xb4   :  { %v3416_v53 = vpack.c.bf16 %v24_v52, %v23_v51 }
  0xb5   :  { %v136_v9 = vpack.c.bf16 %v134_v7, %v133_v8 }
  0xb7   :  { %2768 = vmatmul.mubr.msk.bf16.vlgmr.msra.gmra.mrb[0].mxu1 %vm57_vm0, %v136_v9 }
 0x18a   :  { %v2769_v10 = vpop.f32.mrb[0].mxu1 }
 0x18b   :  { %v198_v12 = vpop.f32.mrb[1].mxu1  ;;  %v3362_v19 = vadd.f32 %v2769_v10, %v2541_v11  ;;  %v31_v10 = vld [vmem:[%s4137_s1 + $0x60] sm:$0xff] }
 0x18c   :  { %v2770_v13 = vpop.f32.mrb[2].mxu1  ;;  %v3354_v15 = vadd.f32 %v2541_v11, %v198_v12 }
 0x18d   :  { %v201_v14 = vpop.f32.mrb[3].mxu1  ;;  %v3358_v17 = vadd.f32 %v2770_v13, %v2541_v11 }
 0x18e   :  { %v3356_v16 = vadd.f32 %v2541_v11, %v201_v14  ;;  %v32_v11 = vld [vmem:[%s4137_s1 + $0x68] sm:$0xff]  ;;  %v33_v14 = vld [vmem:[%s4137_s1 + $0x70] sm:$0xff] }
 0x18f   :  { %v214_v20 = vpack.c.bf16 %v3358_v17, %v3362_v19  ;;  %v3460_v13 = vpack.c.bf16 %v32_v11, %v31_v10  ;;  %v21_v10 = vld [vmem:[%s4137_s1 + $0x10] sm:$0xff] }
 0x190   :  { %v213_v18 = vpack.c.bf16 %v3356_v16, %v3354_v15 }
 0x192   :  { %291 = vrot.lane.b32.xlu1 %v213_v18, %s3262_s29  ;;  %217 = vrot.lane.b32.xlu0 %v213_v18, %s3263_s30 }
 0x193   :  { %2775 = vmatprep.mubr.msk.bf16.mxu1 %vm221_vm1, %v213_v18 }
 0x196   :  { %219 = vrot.lane.b32.xlu1 %v214_v20, %s3263_s30  ;;  %381 = vrot.lane.b32.xlu0 %v213_v18, %s3264_s4 }
 0x19a   :  { %293 = vrot.lane.b32.xlu1 %v214_v20, %s3262_s29  ;;  %471 = vrot.lane.b32.xlu0 %v213_v18, %s3265_s5 }
 0x19e   :  { %287 = vrot.lane.b32.xlu1 %v213_v18, %s3266_s6  ;;  %383 = vrot.lane.b32.xlu0 %v214_v20, %s3264_s4 }
 0x1a2   :  { %289 = vrot.lane.b32.xlu1 %v214_v20, %s3266_s6  ;;  %377 = vrot.lane.b32.xlu0 %v213_v18, %s3267_s7 }
 0x1a6   :  { %473 = vrot.lane.b32.xlu1 %v214_v20, %s3265_s5  ;;  %467 = vrot.lane.b32.xlu0 %v213_v18, %s3268_s8  ;;  %v34_v18 = vld [vmem:[%s4137_s1 + $0x78] sm:$0xff] }
 0x1aa   :  { %379 = vrot.lane.b32.xlu1 %v214_v20, %s3267_s7 }
 0x1ae   :  { %469 = vrot.lane.b32.xlu1 %v214_v20, %s3268_s8 }
 0x204   :  { %v292_v21 = vpop.permute.xlu1 %291  ;;  %v218_v22 = vpop.permute.xlu0 %217 }
 0x205   :  { %3111 = vmatprep.subr.msk.bf16.mxu1 %vm221_vm1, %v218_v22  ;;  %3113 = vmatprep.subr.msk.bf16.mxu0 %vm221_vm1, %v292_v21  ;;  %v229_v23 = vsel %vm221_vm1, %v218_v22, 0  ;;  %v302_v24 = vsel %vm221_vm1, %v292_v21, 0  ;;  %v35_v21 = vld [vmem:[%s4137_s1 + $0x80] sm:$0xff]  ;;  %v36_v22 = vld [vmem:[%s4137_s1 + $0x88] sm:$0xff] }
 0x206   :  { %2772 = vmatpush3.bf16.xpose.msra.mxu1 %v229_v23  ;;  %2780 = vmatpush3.bf16.xpose.msra.mxu0 %v302_v24  ;;  %v3484_v23 = vpack.c.bf16 %v36_v22, %v35_v21  ;;  %v39_v24 = vld [vmem:[%s4137_s1 + $0xa0] sm:$0xff] }
 0x208   :  { %v220_v25 = vpop.permute.xlu1 %219  ;;  %v382_v26 = vpop.permute.xlu0 %381 }
 0x209   :  { %3112 = vmatprep.subr.msk.bf16.mxu1 %vm221_vm1, %v220_v25  ;;  %v232_v29 = vsel %vm221_vm1, %v220_v25, 0  ;;  %v392_v35 = vsel %vm221_vm1, %v382_v26, 0  ;;  %v37_v25 = vld [vmem:[%s4137_s1 + $0x90] sm:$0xff] }
 0x20c   :  { %v294_v27 = vpop.permute.xlu1 %293  ;;  %v472_v28 = vpop.permute.xlu0 %471 }
 0x20d   :  { %3114 = vmatprep.subr.msk.bf16.mxu0 %vm221_vm1, %v294_v27  ;;  %v305_v30 = vsel %vm221_vm1, %v294_v27, 0  ;;  %v482_v36 = vsel %vm221_vm1, %v472_v28, 0  ;;  %v40_v27 = vld [vmem:[%s4137_s1 + $0xa8] sm:$0xff] }
 0x20e   :  { %2774 = vmatpush3.bf16.xpose.msra.mxu1 %v232_v29  ;;  %2782 = vmatpush3.bf16.xpose.msra.mxu0 %v305_v30  ;;  %v41_v29 = vld [vmem:[%s4137_s1 + $0xb0] sm:$0xff]  ;;  %v42_v30 = vld [vmem:[%s4137_s1 + $0xb8] sm:$0xff] }
 0x20f   :  { %3115 = vmatprep.subr.msk.bf16.mxu1 %vm221_vm1, %v382_v26  ;;  %3117 = vmatprep.subr.msk.bf16.mxu0 %vm221_vm1, %v472_v28  ;;  %v38_v26 = vld [vmem:[%s4137_s1 + $0x98] sm:$0xff] }
 0x210   :  { %v288_v31 = vpop.permute.xlu1 %287  ;;  %v384_v32 = vpop.permute.xlu0 %383  ;;  %v3502_v28 = vpack.c.bf16 %v38_v26, %v37_v25 }
 0x211   :  { %2783 = vmatprep.mubr.msk.bf16.mxu0 %vm221_vm1, %v288_v31  ;;  %v395_v39 = vsel %vm221_vm1, %v384_v32, 0  ;;  %v43_v31 = vld [vmem:[%s4137_s1 + $0xc0] sm:$0xff] }
 0x214   :  { %v290_v33 = vpop.permute.xlu1 %289  ;;  %v378_v34 = vpop.permute.xlu0 %377 }
 0x215   :  { %2776 = vmatmul.mubr.msk.bf16.vlgmr.msra.gmra.mrb[4].mxu1 %vm221_vm1, %v214_v20  ;;  %2784 = vmatmul.mubr.msk.bf16.vlgmr.msra.gmra.mrb[0].mxu0 %vm221_vm1, %v290_v33  ;;  %v3472_v20 = vpack.c.bf16 %v34_v18, %v33_v14  ;;  %v45_v33 = vld [vmem:[%s4137_s1 + $0xd0] sm:$0xff]  ;;  %v22_v14 = vld [vmem:[%s4137_s1 + $0x18] sm:$0xff] }
 0x216   :  { %2788 = vmatpush3.bf16.xpose.msra.mxu1 %v392_v35  ;;  %2791 = vmatprep.mubr.msk.bf16.mxu1 %vm221_vm1, %v378_v34  ;;  %v46_v34 = vld [vmem:[%s4137_s1 + $0xd8] sm:$0xff]  ;;  %v47_v35 = vld [vmem:[%s4137_s1 + $0xe0] sm:$0xff] }
 0x217   :  { %2796 = vmatpush3.bf16.xpose.msra.mxu0 %v482_v36  ;;  %3116 = vmatprep.subr.msk.bf16.mxu1 %vm221_vm1, %v384_v32  ;;  %v44_v32 = vld [vmem:[%s4137_s1 + $0xc8] sm:$0xff] }
 0x218   :  { %v474_v37 = vpop.permute.xlu1 %473  ;;  %v468_v38 = vpop.permute.xlu0 %467  ;;  %v48_v36 = vld [vmem:[%s4137_s1 + $0xe8] sm:$0xff] }
 0x219   :  { %3118 = vmatprep.subr.msk.bf16.mxu0 %vm221_vm1, %v474_v37  ;;  %2799 = vmatprep.mubr.msk.bf16.mxu0 %vm221_vm1, %v468_v38  ;;  %v485_v40 = vsel %vm221_vm1, %v474_v37, 0  ;;  %v49_v37 = vld [vmem:[%s4137_s1 + $0xf0] sm:$0xff]  ;;  %v50_v38 = vld [vmem:[%s4137_s1 + $0xf8] sm:$0xff] }
 0x21c   :  { %v380_v41 = vpop.permute.xlu1 %379 }
 0x21e   :  { %2790 = vmatpush3.bf16.xpose.msra.mxu1 %v395_v39  ;;  %v51_v39 = vld [vmem:[%s4137_s1 + $0x100] sm:$0xff] }
 0x21f   :  { %2798 = vmatpush3.bf16.xpose.msra.mxu0 %v485_v40  ;;  %3048 = vmatprep.subr.bf16.mxu1 %v3416_v53  ;;  %v52_v40 = vld [vmem:[%s4137_s1 + $0x108] sm:$0xff] }
 0x220   :  { %v470_v42 = vpop.permute.xlu1 %469 }
 0x225   :  { %2792 = vmatmul.mubr.msk.bf16.vlgmr.msra.gmra.mrb[8].mxu1 %vm221_vm1, %v380_v41  ;;  %v53_v41 = vld [vmem:[%s4137_s1 + $0x110] sm:$0xff] }
 0x226   :  { %2800 = vmatmul.mubr.msk.bf16.vlgmr.msra.gmra.mrb[4].mxu0 %vm221_vm1, %v470_v42  ;;  %3050 = vmatpush3.bf16.msra.mxu1 %v3416_v53  ;;  %v54_v42 = vld [vmem:[%s4137_s1 + $0x118] sm:$0xff] }
 0x227   :  { %3052 = vmatprep.subr.bf16.mxu1 %v3428_v56 }
 0x22a   :  { %3054 = vmatpush3.bf16.msra.mxu1 %v3428_v56 }
 0x22b   :  { %3056 = vmatprep.subr.bf16.mxu1 %v3438_v59 }
 0x22e   :  { %3058 = vmatpush3.bf16.msra.mxu1 %v3438_v59 }
 0x22f   :  { %3060 = vmatprep.subr.bf16.mxu1 %v3448_v63 }
 0x232   :  { %3062 = vmatpush3.bf16.msra.mxu1 %v3448_v63 }
 0x233   :  { %3064 = vmatprep.subr.bf16.mxu1 %v3460_v13 }
 0x236   :  { %3066 = vmatpush3.bf16.msra.mxu1 %v3460_v13 }
 0x237   :  { %3068 = vmatprep.subr.bf16.mxu1 %v3472_v20 }
 0x23a   :  { %3070 = vmatpush3.bf16.msra.mxu1 %v3472_v20 }
 0x23b   :  { %3072 = vmatprep.subr.bf16.mxu1 %v3484_v23 }
 0x23e   :  { %3074 = vmatpush3.bf16.msra.mxu1 %v3484_v23 }
 0x23f   :  { %3076 = vmatprep.subr.bf16.mxu1 %v3502_v28 }
 0x242   :  { %3078 = vmatpush3.bf16.msra.mxu1 %v3502_v28 }
 0x2e8   :  { %v2777_v43 = vpop.f32.mrb[4].mxu1  ;;  %v2785_v44 = vpop.f32.mrb[0].mxu0 }
 0x2e9   :  { %285 = vst.msk [vmem:[#allocation2 + $0x10] sm:$0xff] %vm57_vm0, %v2777_v43  ;;  %v341_v45 = vpop.f32.mrb[1].mxu0  ;;  %364 = vrot.lane.b32.xlu0 %v2785_v44, %s3269_s9  ;;  %v268_v46 = vpop.f32.mrb[5].mxu1 }
 0x2ea   :  { %283 = vst.msk [vmem:[#allocation2] sm:$0xff] %vm57_vm0, %v268_v46  ;;  %v2778_v47 = vpop.f32.mrb[6].mxu1  ;;  %v2786_v48 = vpop.f32.mrb[2].mxu0 }
 0x2eb   :  { %286 = vst.msk [vmem:[#allocation2 + $0x18] sm:$0xff] %vm57_vm0, %v2778_v47  ;;  %366 = vrot.lane.b32.xlu1 %v2786_v48, %s3269_s9  ;;  %v271_v49 = vpop.f32.mrb[7].mxu1  ;;  %v344_v50 = vpop.f32.mrb[3].mxu0 }
 0x2ec   :  { %284 = vst.msk [vmem:[#allocation2 + $0x8] sm:$0xff] %vm57_vm0, %v271_v49 }
 0x2ed   :  { %360 = vrot.lane.b32.xlu0 %v341_v45, %s3269_s9 }
 0x2ef   :  { %362 = vrot.lane.b32.xlu1 %v344_v50, %s3269_s9 }
 0x2f8   :  { %v2793_v62 = vpop.f32.mrb[8].mxu1 }
 0x2f9   :  { %v2801_v3 = vpop.f32.mrb[4].mxu0  ;;  %454 = vrot.lane.b32.xlu0 %v2793_v62, %s3270_s25  ;;  %v431_v4 = vpop.f32.mrb[9].mxu1 }
 0x2fa   :  { %v521_v6 = vpop.f32.mrb[5].mxu0  ;;  %v2794_v7 = vpop.f32.mrb[10].mxu1 }
 0x2fb   :  { %v2802_v8 = vpop.f32.mrb[6].mxu0  ;;  %456 = vrot.lane.b32.xlu1 %v2794_v7, %s3270_s25  ;;  %v434_v9 = vpop.f32.mrb[11].mxu1 }
 0x2fc   :  { %v524_v12 = vpop.f32.mrb[7].mxu0 }
 0x2fd   :  { %450 = vrot.lane.b32.xlu0 %v431_v4, %s3270_s25 }
 0x2ff   :  { %452 = vrot.lane.b32.xlu1 %v434_v9, %s3270_s25 }
 0x301   :  { %540 = vrot.lane.b32.xlu0 %v521_v6, %s3263_s30 }
 0x303   :  { %542 = vrot.lane.b32.xlu1 %v524_v12, %s3263_s30 }
 0x305   :  { %544 = vrot.lane.b32.xlu0 %v2801_v3, %s3263_s30 }
 0x307   :  { %546 = vrot.lane.b32.xlu1 %v2802_v8, %s3263_s30 }
 0x309   :  { %682 = vrot.lane.b32.xlu0 %v39_v24, %s3270_s25 }
 0x30b   :  { %684 = vrot.lane.b32.xlu1 %v40_v27, %s3270_s25 }
 0x30d   :  { %686 = vrot.lane.b32.xlu0 %v41_v29, %s3270_s25 }
 0x30f   :  { %688 = vrot.lane.b32.xlu1 %v42_v30, %s3270_s25 }
 0x311   :  { %690 = vrot.lane.b32.xlu0 %v43_v31, %s3270_s25 }
 0x313   :  { %692 = vrot.lane.b32.xlu1 %v44_v32, %s3270_s25 }
 0x315   :  { %694 = vrot.lane.b32.xlu0 %v45_v33, %s3270_s25 }
 0x317   :  { %696 = vrot.lane.b32.xlu1 %v46_v34, %s3270_s25 }
 0x319   :  { %698 = vrot.lane.b32.xlu0 %v47_v35, %s3270_s25 }
 0x31b   :  { %700 = vrot.lane.b32.xlu1 %v48_v36, %s3270_s25 }
 0x31d   :  { %702 = vrot.lane.b32.xlu0 %v49_v37, %s3270_s25 }
 0x31f   :  { %704 = vrot.lane.b32.xlu1 %v50_v38, %s3270_s25 }
 0x321   :  { %706 = vrot.lane.b32.xlu0 %v51_v39, %s3270_s25 }
 0x323   :  { %708 = vrot.lane.b32.xlu1 %v52_v40, %s3270_s25 }
 0x325   :  { %710 = vrot.lane.b32.xlu0 %v53_v41, %s3270_s25 }
 0x327   :  { %712 = vrot.lane.b32.xlu1 %v54_v42, %s3270_s25 }
 0x35b   :  { %v365_v43 = vpop.permute.xlu0 %364 }
 0x35c   :  { %375 = vst.msk [vmem:[#allocation2 + $0x10] sm:$0xff] %vm372_vm2, %v365_v43 }
 0x35d   :  { %v367_v44 = vpop.permute.xlu1 %366 }
 0x35e   :  { %376 = vst.msk [vmem:[#allocation2 + $0x18] sm:$0xff] %vm372_vm2, %v367_v44 }
 0x35f   :  { %v361_v45 = vpop.permute.xlu0 %360 }
 0x360   :  { %373 = vst.msk [vmem:[#allocation2] sm:$0xff] %vm372_vm2, %v361_v45 }
 0x361   :  { %v363_v46 = vpop.permute.xlu1 %362 }
 0x362   :  { %374 = vst.msk [vmem:[#allocation2 + $0x8] sm:$0xff] %vm372_vm2, %v363_v46 }
 0x36b   :  { %v455_v47 = vpop.permute.xlu0 %454 }
 0x36c   :  { %465 = vst.msk [vmem:[#allocation2 + $0x10] sm:$0xff] %vm462_vm3, %v455_v47 }
 0x36d   :  { %v457_v48 = vpop.permute.xlu1 %456 }
 0x36e   :  { %466 = vst.msk [vmem:[#allocation2 + $0x18] sm:$0xff] %vm462_vm3, %v457_v48 }
 0x36f   :  { %v451_v49 = vpop.permute.xlu0 %450 }
 0x370   :  { %463 = vst.msk [vmem:[#allocation2] sm:$0xff] %vm462_vm3, %v451_v49 }
 0x371   :  { %v453_v50 = vpop.permute.xlu1 %452 }
 0x372   :  { %464 = vst.msk [vmem:[#allocation2 + $0x8] sm:$0xff] %vm462_vm3, %v453_v50 }
 0x373   :  { %v541_v51 = vpop.permute.xlu0 %540 }
 0x374   :  { %553 = vst.msk [vmem:[#allocation2] sm:$0xff] %vm552_vm4, %v541_v51 }
 0x375   :  { %v543_v52 = vpop.permute.xlu1 %542 }
 0x376   :  { %554 = vst.msk [vmem:[#allocation2 + $0x8] sm:$0xff] %vm552_vm4, %v543_v52 }
 0x377   :  { %v545_v54 = vpop.permute.xlu0 %544 }
 0x378   :  { %555 = vst.msk [vmem:[#allocation2 + $0x10] sm:$0xff] %vm552_vm4, %v545_v54 }
 0x379   :  { %v547_v55 = vpop.permute.xlu1 %546 }
 0x37a   :  { %556 = vst.msk [vmem:[#allocation2 + $0x18] sm:$0xff] %vm552_vm4, %v547_v55 }
 0x37b   :  { %v3582_v60 = vpop.permute.xlu0 %682  ;;  %v557_v61 = vld [vmem:[#allocation2] sm:$0xff] }
 0x37c   :  { %v561_v62 = vadd.f32 %v557_v61, %v19_v57  ;;  %v730_v7 = vmul.f32 %v3582_v60, %v3354_v15 }
 0x37d   :  { %v558_v3 = vld [vmem:[#allocation2 + $0x8] sm:$0xff]  ;;  %v3584_v4 = vpop.permute.xlu1 %684 }
 0x37e   :  { %v562_v6 = vadd.f32 %v558_v3, %v20_v58  ;;  %v731_v8 = vmul.f32 %v3584_v4, %v3356_v16  ;;  %v565_v9 = vmul.f32 1.442695, %v561_v62 }
 0x37f   :  { %v3593_v11 = vpop.permute.xlu0 %686  ;;  %v559_v12 = vld [vmem:[#allocation2 + $0x10] sm:$0xff] }
 0x380   :  { %v567_v18 = vmul.f32 1.442695, %v562_v6  ;;  %v746_v21 = vpack.c.bf16 %v731_v8, %v730_v7  ;;  %3178 = vpow2.f32 %v565_v9  ;;  %v563_v24 = vadd.f32 %v559_v12, %v21_v10 }
 0x381   :  { %v3598_v22 = vpop.permute.xlu1 %688  ;;  %v560_v25 = vld [vmem:[#allocation2 + $0x18] sm:$0xff]  ;;  %v732_v26 = vmul.f32 %v3593_v11, %v3362_v19 }
 0x382   :  { %3180 = vpow2.f32 %v567_v18  ;;  %v733_v27 = vmul.f32 %v3598_v22, %v3358_v17  ;;  %764 = vrot.lane.b32.xlu0 %v746_v21, %s3270_s25  ;;  %v564_v29 = vadd.f32 %v560_v25, %v22_v14  ;;  %v569_v31 = vmul.f32 1.442695, %v563_v24 }
 0x383   :  { %v3605_v30 = vpop.permute.xlu0 %690 }
 0x384   :  { %v747_v32 = vpack.c.bf16 %v733_v27, %v732_v26  ;;  %v571_v33 = vmul.f32 1.442695, %v564_v29  ;;  %3182 = vpow2.f32 %v569_v31  ;;  %v734_v35 = vmul.f32 %v3605_v30, %v3354_v15 }
 0x385   :  { %v3607_v34 = vpop.permute.xlu1 %692 }
 0x386   :  { %v735_v36 = vmul.f32 %v3607_v34, %v3356_v16  ;;  %766 = vrot.lane.b32.xlu1 %v747_v32, %s3270_s25  ;;  %3184 = vpow2.f32 %v571_v33 }
 0x387   :  { %v3614_v37 = vpop.permute.xlu0 %694 }
 0x388   :  { %v748_v38 = vpack.c.bf16 %v735_v36, %v734_v35  ;;  %v736_v41 = vmul.f32 %v3614_v37, %v3362_v19 }
 0x389   :  { %v3616_v39 = vpop.permute.xlu1 %696 }
 0x38a   :  { %v3618_v40 = vpop.eup %3178  ;;  %v737_v42 = vmul.f32 %v3616_v39, %v3358_v17  ;;  %768 = vrot.lane.b32.xlu0 %v748_v38, %s3270_s25 }
 0x38b   :  { %2835 = vmatprep.mubr.f32.mxu1 %v3618_v40  ;;  %v3626_v43 = vpop.permute.xlu0 %698 }
 0x38c   :  { %v3628_v44 = vpop.eup %3180  ;;  %v749_v45 = vpack.c.bf16 %v737_v42, %v736_v41  ;;  %v738_v47 = vmul.f32 %v3626_v43, %v3354_v15 }
 0x38d   :  { %v3630_v46 = vpop.permute.xlu1 %700  ;;  %2836 = vmatmul.mubr.f32.vlgmr.msra.gmra.mrb[12].mxu1 %v3628_v44 }
 0x38e   :  { %v739_v48 = vmul.f32 %v3630_v46, %v3356_v16  ;;  %770 = vrot.lane.b32.xlu1 %v749_v45, %s3270_s25  ;;  %v3638_v49 = vpop.eup %3182 }
 0x38f   :  { %v3640_v50 = vpop.permute.xlu0 %702  ;;  %2838 = vmatprep.mubr.f32.mxu1 %v3638_v49 }
 0x390   :  { %v3642_v51 = vpop.eup %3184  ;;  %v750_v52 = vpack.c.bf16 %v739_v48, %v738_v47  ;;  %v740_v55 = vmul.f32 %v3640_v50, %v3362_v19 }
 0x391   :  { %v3645_v54 = vpop.permute.xlu1 %704  ;;  %2839 = vmatmul.mubr.f32.gmra.mrb[14].mxu1 %v3642_v51 }
 0x392   :  { %v741_v57 = vmul.f32 %v3645_v54, %v3358_v17  ;;  %772 = vrot.lane.b32.xlu0 %v750_v52, %s3270_s25 }
 0x393   :  { %v3653_v58 = vpop.permute.xlu0 %706 }
 0x394   :  { %v751_v61 = vpack.c.bf16 %v741_v57, %v740_v55  ;;  %v742_v3 = vmul.f32 %v3653_v58, %v3354_v15  ;;  %v3141_v55 = vld [vmem:[%s4136_s2 + $0x18] sm:$0xff]  }
 0x395   :  { %v3655_v62 = vpop.permute.xlu1 %708 }
 0x396   :  { %v743_v6 = vmul.f32 %v3655_v62, %v3356_v16  ;;  %774 = vrot.lane.b32.xlu1 %v751_v61, %s3270_s25  ;;  %v3140_v16 = vld [vmem:[%s4136_s2 + $0x10] sm:$0xff]  }
 0x397   :  { %v3662_v7 = vpop.permute.xlu0 %710  ;;  %2861 = vmatprep.subr.bf16.mxu1 %v3140_v16 }
 0x398   :  { %v752_v8 = vpack.c.bf16 %v743_v6, %v742_v3  ;;  %v744_v10 = vmul.f32 %v3662_v7, %v3362_v19  ;;  %2862 = vmatpush3.bf16.msra.mxu1 %v3140_v16 }
 0x399   :  { %v3664_v9 = vpop.permute.xlu1 %712  ;;  %2863 = vmatprep.subr.bf16.mxu1 %v3141_v55 }
 0x39a   :  { %v745_v12 = vmul.f32 %v3664_v9, %v3358_v17  ;;  %776 = vrot.lane.b32.xlu0 %v752_v8, %s3270_s25 }
 0x39c   :  { %v753_v14 = vpack.c.bf16 %v745_v12, %v744_v10  ;;  %2864 = vmatpush3.bf16.msra.mxu1 %v3141_v55 }
 0x39e   :  { %778 = vrot.lane.b32.xlu1 %v753_v14, %s3270_s25 }
 0x3f4   :  { %v765_v15 = vpop.permute.xlu0 %764 }
 0x3f5   :  { %2841 = vmatprep.subr.bf16.mxu0 %v765_v15 }
 0x3f6   :  { %2842 = vmatpush3.bf16.msra.mxu0 %v765_v15 }
 0x3f8   :  { %v767_v18 = vpop.permute.xlu1 %766 }
 0x3f9   :  { %2843 = vmatprep.subr.bf16.mxu0 %v767_v18 }
 0x3fa   :  { %2844 = vmatpush3.bf16.msra.mxu0 %v767_v18 }
 0x3fc   :  { %v769_v19 = vpop.permute.xlu0 %768 }
 0x3fd   :  { %2845 = vmatprep.subr.bf16.mxu0 %v769_v19 }
 0x3fe   :  { %2846 = vmatpush3.bf16.msra.mxu0 %v769_v19 }
 0x400   :  { %v771_v17 = vpop.permute.xlu1 %770 }
 0x401   :  { %2847 = vmatprep.subr.bf16.mxu0 %v771_v17 }
 0x402   :  { %2848 = vmatpush3.bf16.msra.mxu0 %v771_v17 }
 0x404   :  { %v773_v21 = vpop.permute.xlu0 %772 }
 0x405   :  { %2849 = vmatprep.subr.bf16.mxu0 %v773_v21 }
 0x406   :  { %2850 = vmatpush3.bf16.msra.mxu0 %v773_v21 }
 0x408   :  { %v775_v24 = vpop.permute.xlu1 %774 }
 0x409   :  { %2851 = vmatprep.subr.bf16.mxu0 %v775_v24 }
 0x40a   :  { %2852 = vmatpush3.bf16.msra.mxu0 %v775_v24 }
 0x40c   :  { %v777_v25 = vpop.permute.xlu0 %776 }
 0x40d   :  { %2853 = vmatprep.subr.bf16.mxu0 %v777_v25 }
 0x40e   :  { %2854 = vmatpush3.bf16.msra.mxu0 %v777_v25 }
 0x410   :  { %v779_v26 = vpop.permute.xlu1 %778 }
 0x411   :  { %2855 = vmatprep.subr.bf16.mxu0 %v779_v26 }
 0x412   :  { %2856 = vmatpush3.bf16.msra.mxu0 %v779_v26 }
 0x460   :  { %v2837_v27 = vpop.f32.mrb[12].mxu1 }
 0x461   :  { %3186 = vrcp.f32 %v2837_v27  ;;  %v639_v29 = vpop.f32.mrb[13].mxu1 }
 0x462   :  { %3188 = vrcp.f32 %v639_v29 }
 0x464   :  { %v2840_v31 = vpop.f32.mrb[14].mxu1 }
 0x465   :  { %3190 = vrcp.f32 %v2840_v31  ;;  %v649_v32 = vpop.f32.mrb[15].mxu1 }
 0x466   :  { %3192 = vrcp.f32 %v649_v32 }
 0x46b   :  { %v3187_v33 = vpop.eup %3186 }
 0x46c   :  { %v3189_v35 = vpop.eup %3188  ;;  %v663_v36 = vmul.f32 %v3187_v33, %v3628_v44 }
 0x46d   :  { %v662_v38 = vmul.f32 %v3189_v35, %v3618_v40 }
 0x46f   :  { %v3191_v41 = vpop.eup %3190  ;;  %v754_v42 = vpack.c.bf16 %v663_v36, %v662_v38  ;;  %v3142_v36 = vld [vmem:[%s4136_s2 + $0x20] sm:$0xff]   ;;  %v3143_v38 = vld [vmem:[%s4136_s2 + $0x28] sm:$0xff]  }
 0x470   :  { %v3193_v45 = vpop.eup %3192  ;;  %v665_v47 = vmul.f32 %v3191_v41, %v3642_v51  ;;  %2869 = vmatprep.subr.bf16.mxu0 %v3142_v36 }
 0x471   :  { %2857 = vmatprep.mubr.bf16.mxu0 %v754_v42  ;;  %v664_v48 = vmul.f32 %v3193_v45, %v3638_v49  ;;  %v2558_v49 = vld [vmem:[%s4137_s1 + $0x123] ss:$0 sm:$0xff] }
 0x473   :  { %v755_v52 = vpack.c.bf16 %v665_v47, %v664_v48 }
 0x475   :  { %2858 = vmatmul.mubr.bf16.vlgmr.msra.gmra.mrb[8].mxu0 %v755_v52 }
 0x476   :  { %2870 = vmatpush3.bf16.msra.mxu0 %v3142_v36 }
 0x477   :  { %2871 = vmatprep.subr.bf16.mxu0 %v3143_v38 }
 0x47a   :  { %2872 = vmatpush3.bf16.msra.mxu0 %v3143_v38 }
 0x548   :  { %v2859_v57 = vpop.f32.mrb[8].mxu0 }
 0x549   :  { %v822_v44 = vpop.f32.mrb[9].mxu0 }
 0x54a   :  { %v2860_v61 = vpop.f32.mrb[10].mxu0 }
 0x54b   :  { %v838_v40 = vpack.c.bf16 %v2860_v61, %v2859_v57  ;;  %v825_v3 = vpop.f32.mrb[11].mxu0 }
 0x54c   :  { %v837_v6 = vpack.c.bf16 %v825_v3, %v822_v44 }
 0x54e   :  { %2865 = vmatprep.mubr.msk.bf16.mxu1 %vm57_vm0, %v837_v6 }
 0x54f   :  { %2866 = vmatmul.mubr.msk.bf16.vlgmr.msra.gmra.mrb[16].mxu1 %vm57_vm0, %v838_v40 }
 0x622   :  { %v2867_v51 = vpop.f32.mrb[16].mxu1 }
 0x623   :  { %v912_v8 = vadd.f32 %v2867_v51, %v3296_v0  ;;  %v895_v10 = vpop.f32.mrb[17].mxu1 }
 0x624   :  { %v910_v12 = vadd.f32 %v895_v10, %v3301_v1  ;;  %v2868_v14 = vpop.f32.mrb[18].mxu1 }
 0x625   :  { %v3689_v15 = vadd.f32 %v2558_v49, %v912_v8  ;;  %v898_v16 = vpop.f32.mrb[19].mxu1  ;;  %v913_v18 = vadd.f32 %v2868_v14, %v3306_v2 }
 0x626   :  { %v911_v19 = vadd.f32 %v898_v16, %v3315_v5  ;;  %v3693_v17 = vadd.f32 %v2558_v49, %v910_v12 }
 0x627   :  { %v931_v21 = vsel %vm57_vm0, %v3689_v15, 0.0  ;;  %v3699_v0 = vadd.f32 %v2558_v49, %v913_v18  ;;  %v943_v33 = vmul.f32 %v3689_v15, %v3689_v15 }
 0x628   :  { %v3697_v24 = vadd.f32 %v2558_v49, %v911_v19  ;;  %932 = vadd.xlane.f32.xlu0 %v931_v21  ;;  %v925_v2 = vsel %vm57_vm0, %v3693_v17, 0.0  ;;  %v941_v29 = vmul.f32 %v3693_v17, %v3693_v17 }
 0x629   :  { %v944_v26 = vmul.f32 %v3699_v0, %v3699_v0  ;;  %v934_v27 = vsel %vm57_vm0, %v3699_v0, 0.0  ;;  %v951_v35 = vsel %vm57_vm0, %v943_v33, 0.0 }
 0x62a   :  { %v928_v1 = vsel %vm57_vm0, %v3697_v24, 0.0  ;;  %v942_v25 = vmul.f32 %v3697_v24, %v3697_v24  ;;  %v945_v32 = vsel %vm57_vm0, %v941_v29, 0.0 }
 0x62b   :  { %929 = vadd.xlane.f32.xlu1 %v928_v1  ;;  %v954_v31 = vsel %vm57_vm0, %v944_v26, 0.0 }
 0x62c   :  { %926 = vadd.xlane.f32.xlu0 %v925_v2  ;;  %v948_v5 = vsel %vm57_vm0, %v942_v25, 0.0 }
 0x62f   :  { %949 = vadd.xlane.f32.xlu1 %v948_v5 }
 0x630   :  { %935 = vadd.xlane.f32.xlu0 %v934_v27 }
 0x633   :  { %955 = vadd.xlane.f32.xlu1 %v954_v31 }
 0x634   :  { %946 = vadd.xlane.f32.xlu0 %v945_v32  ;;  %v2559_v32 = vld [vmem:[%s4137_s1 + $0x124] ss:$0 sm:$0xff] }
 0x638   :  { %952 = vadd.xlane.f32.xlu0 %v951_v35 }
 0x6b5   :  { %v933_v41 = vpop.xlane.xlu0 %932 }
 0x6b6   :  { %v939_v10 = vmul.f32 0.03125, %v933_v41 }
 0x6b8   :  { %v930_v42 = vpop.xlane.xlu1 %929  ;;  %v963_v1 = vmul.f32 %v939_v10, %v939_v10 }
 0x6b9   :  { %v938_v45 = vmul.f32 0.03125, %v930_v42  ;;  %v927_v47 = vpop.xlane.xlu0 %926 }
 0x6ba   :  { %v937_v44 = vmul.f32 0.03125, %v927_v47 }
 0x6bb   :  { %v962_v52 = vmul.f32 %v938_v45, %v938_v45  ;;  %v970_v29 = vsub.f32 %v3697_v24, %v938_v45  ;;  %v971_v45 = vsub.f32 %v3689_v15, %v939_v10  ;;  %v3145_v10 = vld [vmem:[%s4136_s2 + $0x38] sm:$0xff]  }
 0x6bc   :  { %v950_v48 = vpop.xlane.xlu1 %949  ;;  %v961_v12 = vmul.f32 %v937_v44, %v937_v44  ;;  %v969_v35 = vsub.f32 %v3693_v17, %v937_v44 }
 0x6bd   :  { %v958_v55 = vmul.f32 0.03125, %v950_v48  ;;  %v936_v57 = vpop.xlane.xlu0 %935  ;;  %v2560_v48 = vld [vmem:[%s4137_s1 + $0x125] ss:$0 sm:$0xff] }
 0x6be   :  { %v940_v61 = vmul.f32 0.03125, %v936_v57 }
 0x6bf   :  { %v966_v40 = vsub.f32 %v958_v55, %v962_v52 }
 0x6c0   :  { %v964_v3 = vmul.f32 %v940_v61, %v940_v61  ;;  %v956_v6 = vpop.xlane.xlu1 %955  ;;  %v972_v36 = vsub.f32 %v3699_v0, %v940_v61 }
 0x6c1   :  { %v974_v51 = vadd.f32 1e-12, %v966_v40  ;;  %v960_v49 = vmul.f32 0.03125, %v956_v6  ;;  %v947_v8 = vpop.xlane.xlu0 %946 }
 0x6c2   :  { %v957_v14 = vmul.f32 0.03125, %v947_v8 }
 0x6c3   :  { %3194 = vrsqrt.f32 %v974_v51  ;;  %v968_v16 = vsub.f32 %v960_v49, %v964_v3 }
 0x6c4   :  { %v965_v18 = vsub.f32 %v957_v14, %v961_v12  ;;  %v3144_v12 = vld [vmem:[%s4136_s2 + $0x30] sm:$0xff]   ;;  %v3146_v14 = vld [vmem:[%s4136_s2 + $0x40] sm:$0xff]  }
 0x6c5   :  { %v976_v19 = vadd.f32 1e-12, %v968_v16  ;;  %v953_v21 = vpop.xlane.xlu0 %952  ;;  %2877 = vmatprep.subr.bf16.mxu1 %v3144_v12  ;;  %v3147_v16 = vld [vmem:[%s4136_s2 + $0x48] sm:$0xff]  }
 0x6c6   :  { %v973_v25 = vadd.f32 1e-12, %v965_v18  ;;  %v959_v2 = vmul.f32 0.03125, %v953_v21  ;;  %2878 = vmatpush3.bf16.msra.mxu1 %v3144_v12  ;;  %v3148_v18 = vld [vmem:[%s4136_s2 + $0x50] sm:$0xff]   ;;  %v3150_v21 = vld [vmem:[%s4136_s2 + $0x60] sm:$0xff]  }
 0x6c7   :  { %3196 = vrsqrt.f32 %v976_v19  ;;  %2879 = vmatprep.subr.bf16.mxu1 %v3145_v10  ;;  %v3149_v19 = vld [vmem:[%s4136_s2 + $0x58] sm:$0xff]  }
 0x6c8   :  { %3198 = vrsqrt.f32 %v973_v25  ;;  %v967_v5 = vsub.f32 %v959_v2, %v963_v1  ;;  %v3151_v1 = vld [vmem:[%s4136_s2 + $0x68] sm:$0xff]   ;;  %v2561_v25 = vld [vmem:[%s4137_s1 + $0x126] ss:$0 sm:$0xff] }
 0x6ca   :  { %v975_v26 = vadd.f32 1e-12, %v967_v5  ;;  %2880 = vmatpush3.bf16.msra.mxu1 %v3145_v10 }
 0x6cb   :  { %2881 = vmatprep.subr.bf16.mxu1 %v3146_v14 }
 0x6cc   :  { %3200 = vrsqrt.f32 %v975_v26 }
 0x6cd   :  { %v3195_v27 = vpop.eup %3194 }
 0x6ce   :  { %v982_v31 = vmul.f32 %v3195_v27, %v970_v29  ;;  %2882 = vmatpush3.bf16.msra.mxu1 %v3146_v14 }
 0x6cf   :  { %2883 = vmatprep.subr.bf16.mxu1 %v3147_v16 }
 0x6d0   :  { %v990_v47 = vmul.f32 %v2559_v32, %v982_v31 }
 0x6d1   :  { %v3197_v33 = vpop.eup %3196 }
 0x6d2   :  { %v3199_v38 = vpop.eup %3198  ;;  %v984_v41 = vmul.f32 %v3197_v33, %v972_v36  ;;  %v998_v3 = vadd.f32 %v2560_v48, %v990_v47  ;;  %2884 = vmatpush3.bf16.msra.mxu1 %v3147_v16 }
 0x6d3   :  { %v981_v42 = vmul.f32 %v3199_v38, %v969_v35  ;;  %2885 = vmatprep.subr.bf16.mxu1 %v3148_v18 }
 0x6d4   :  { %v992_v6 = vmul.f32 %v2559_v32, %v984_v41 }
 0x6d5   :  { %v989_v52 = vmul.f32 %v2559_v32, %v981_v42 }
 0x6d6   :  { %v3201_v55 = vpop.eup %3200  ;;  %v1000_v49 = vadd.f32 %v2560_v48, %v992_v6  ;;  %2886 = vmatpush3.bf16.msra.mxu1 %v3148_v18 }
 0x6d7   :  { %v983_v57 = vmul.f32 %v3201_v55, %v971_v45  ;;  %v997_v40 = vadd.f32 %v2560_v48, %v989_v52  ;;  %2887 = vmatprep.subr.bf16.mxu1 %v3149_v19 }
 0x6d9   :  { %v1001_v51 = vpack.c.bf16 %v998_v3, %v997_v40  ;;  %v991_v44 = vmul.f32 %v2559_v32, %v983_v57 }
 0x6da   :  { %2888 = vmatpush3.bf16.msra.mxu1 %v3149_v19 }
 0x6db   :  { %2873 = vmatprep.mubr.msk.bf16.mxu0 %vm57_vm0, %v1001_v51  ;;  %v999_v61 = vadd.f32 %v2560_v48, %v991_v44  ;;  %2889 = vmatprep.subr.bf16.mxu1 %v3150_v21 }
 0x6dd   :  { %v1002_v8 = vpack.c.bf16 %v1000_v49, %v999_v61 }
 0x6de   :  { %2890 = vmatpush3.bf16.msra.mxu1 %v3150_v21 }
 0x6df   :  { %2874 = vmatmul.mubr.msk.bf16.vlgmr.msra.gmra.mrb[12].mxu0 %vm57_vm0, %v1002_v8  ;;  %2891 = vmatprep.subr.bf16.mxu1 %v3151_v1 }
 0x6e2   :  { %2892 = vmatpush3.bf16.msra.mxu1 %v3151_v1 }
 0x7b2   :  { %v2875_v2 = vpop.f32.mrb[12].mxu0 }
 0x7b3   :  { %v1073_v5 = vadd.f32 %v2875_v2, %v2561_v25  ;;  %v1064_v26 = vpop.f32.mrb[13].mxu0 }
 0x7b4   :  { %v1065_v27 = vadd.f32 %v2561_v25, %v1064_v26  ;;  %v2876_v29 = vpop.f32.mrb[14].mxu0 }
 0x7b5   :  { %v1085_v31 = vmul.f32 0.044715, %v1073_v5  ;;  %v1076_v32 = vadd.f32 %v2876_v29, %v2561_v25  ;;  %v1067_v33 = vpop.f32.mrb[15].mxu0  ;;  %v1081_v1 = vmul.f32 0.5, %v1073_v5 }
 0x7b6   :  { %v1083_v35 = vmul.f32 0.044715, %v1065_v27  ;;  %v1068_v36 = vadd.f32 %v2561_v25, %v1067_v33  ;;  %v1079_v26 = vmul.f32 0.5, %v1065_v27 }
 0x7b7   :  { %v1089_v38 = vmul.f32 %v1085_v31, %v1073_v5  ;;  %v1086_v41 = vmul.f32 0.044715, %v1076_v32  ;;  %v1082_v25 = vmul.f32 0.5, %v1076_v32 }
 0x7b8   :  { %v1087_v42 = vmul.f32 %v1083_v35, %v1065_v27  ;;  %v1084_v47 = vmul.f32 0.044715, %v1068_v36  ;;  %v1080_v29 = vmul.f32 0.5, %v1068_v36 }
 0x7b9   :  { %v1093_v48 = vmul.f32 %v1089_v38, %v1073_v5  ;;  %v1090_v45 = vmul.f32 %v1086_v41, %v1076_v32 }
 0x7ba   :  { %v1091_v52 = vmul.f32 %v1087_v42, %v1065_v27  ;;  %v1088_v55 = vmul.f32 %v1084_v47, %v1068_v36 }
 0x7bb   :  { %v1097_v57 = vadd.f32 %v1093_v48, %v1073_v5  ;;  %v1094_v40 = vmul.f32 %v1090_v45, %v1076_v32  ;;  %v2574_v45 = vld [vmem:[%s4137_s1 + $0x127] ss:$0 sm:$0xff] }
 0x7bc   :  { %v1092_v3 = vmul.f32 %v1088_v55, %v1068_v36  ;;  %v1095_v6 = vadd.f32 %v1091_v52, %v1065_v27 }
 0x7bd   :  { %v1101_v51 = vmul.f32 0.7978846, %v1097_v57  ;;  %v1098_v44 = vadd.f32 %v1094_v40, %v1076_v32 }
 0x7be   :  { %v1096_v61 = vadd.f32 %v1092_v3, %v1068_v36  ;;  %v1099_v49 = vmul.f32 0.7978846, %v1095_v6 }
 0x7bf   :  { %3202 = vtanh.f32 %v1101_v51  ;;  %v1102_v8 = vmul.f32 0.7978846, %v1098_v44 }
 0x7c0   :  { %v1100_v12 = vmul.f32 0.7978846, %v1096_v61  ;;  %3204 = vtanh.f32 %v1099_v49 }
 0x7c1   :  { %3206 = vtanh.f32 %v1102_v8 }
 0x7c2   :  { %3208 = vtanh.f32 %v1100_v12 }
 0x7c9   :  { %v3203_v10 = vpop.eup %3202 }
 0x7ca   :  { %v3205_v14 = vpop.eup %3204  ;;  %v1109_v16 = vadd.f32 1.0, %v3203_v10 }
 0x7cb   :  { %v3207_v18 = vpop.eup %3206  ;;  %v1107_v19 = vadd.f32 1.0, %v3205_v14 }
 0x7cc   :  { %v3209_v21 = vpop.eup %3208  ;;  %v1110_v2 = vadd.f32 1.0, %v3207_v18  ;;  %v1113_v33 = vmul.f32 %v1109_v16, %v1081_v1  ;;  %v3152_v18 = vld [vmem:[%s4136_s2 + $0x70] sm:$0xff]  }
 0x7cd   :  { %v1108_v31 = vadd.f32 1.0, %v3209_v21  ;;  %v1111_v38 = vmul.f32 %v1107_v19, %v1079_v26  ;;  %v3153_v19 = vld [vmem:[%s4136_s2 + $0x78] sm:$0xff]   ;;  %2897 = vmatprep.subr.bf16.mxu0 %v3152_v18 }
 0x7ce   :  { %v1114_v35 = vmul.f32 %v1110_v2, %v1082_v25  ;;  %2898 = vmatpush3.bf16.msra.mxu0 %v3152_v18 }
 0x7cf   :  { %v1112_v41 = vmul.f32 %v1108_v31, %v1080_v29  ;;  %2899 = vmatprep.subr.bf16.mxu0 %v3153_v19 }
 0x7d0   :  { %v1116_v42 = vpack.c.bf16 %v1114_v35, %v1113_v33 }
 0x7d1   :  { %v1115_v47 = vpack.c.bf16 %v1112_v41, %v1111_v38 }
 0x7d2   :  { %2900 = vmatpush3.bf16.msra.mxu0 %v3153_v19 }
 0x7d3   :  { %2893 = vmatprep.mubr.bf16.mxu1 %v1115_v47 }
 0x7d4   :  { %2894 = vmatmul.mubr.bf16.vlgmr.msra.gmra.mrb[20].mxu1 %v1116_v42 }
 0x8a7   :  { %v2895_v48 = vpop.f32.mrb[20].mxu1 }
 0x8a8   :  { %v1232_v5 = vadd.f32 %v2895_v48, %v3689_v15  ;;  %v1215_v32 = vpop.f32.mrb[21].mxu1 }
 0x8a9   :  { %v1230_v27 = vadd.f32 %v1215_v32, %v3693_v17  ;;  %v2896_v36 = vpop.f32.mrb[22].mxu1 }
 0x8aa   :  { %v3769_v52 = vadd.f32 %v2574_v45, %v1232_v5  ;;  %v1233_v55 = vadd.f32 %v2896_v36, %v3699_v0  ;;  %v1218_v57 = vpop.f32.mrb[23].mxu1 }
 0x8ab   :  { %v1231_v40 = vadd.f32 %v1218_v57, %v3697_v24  ;;  %v3773_v3 = vadd.f32 %v2574_v45, %v1230_v27 }
 0x8ac   :  { %v3775_v6 = vadd.f32 %v2574_v45, %v1233_v55  ;;  %v1251_v51 = vsel %vm57_vm0, %v3769_v52, 0.0  ;;  %v1263_v8 = vmul.f32 %v3769_v52, %v3769_v52 }
 0x8ad   :  { %1252 = vadd.xlane.f32.xlu0 %v1251_v51  ;;  %v3779_v15 = vadd.f32 %v2574_v45, %v1231_v40  ;;  %v1245_v0 = vsel %vm57_vm0, %v3773_v3, 0.0  ;;  %v1261_v24 = vmul.f32 %v3773_v3, %v3773_v3 }
 0x8ae   :  { %v1254_v17 = vsel %vm57_vm0, %v3775_v6, 0.0  ;;  %v1264_v10 = vmul.f32 %v3775_v6, %v3775_v6  ;;  %v1271_v14 = vsel %vm57_vm0, %v1263_v8, 0.0 }
 0x8af   :  { %1255 = vadd.xlane.f32.xlu1 %v1254_v17  ;;  %v1248_v44 = vsel %vm57_vm0, %v3779_v15, 0.0  ;;  %v1262_v61 = vmul.f32 %v3779_v15, %v3779_v15  ;;  %v1265_v49 = vsel %vm57_vm0, %v1261_v24, 0.0 }
 0x8b0   :  { %v1274_v16 = vsel %vm57_vm0, %v1264_v10, 0.0 }
 0x8b1   :  { %1246 = vadd.xlane.f32.xlu0 %v1245_v0  ;;  %v1268_v12 = vsel %vm57_vm0, %v1262_v61, 0.0 }
 0x8b3   :  { %1249 = vadd.xlane.f32.xlu1 %v1248_v44 }
 0x8b5   :  { %1266 = vadd.xlane.f32.xlu0 %v1265_v49 }
 0x8b7   :  { %1269 = vadd.xlane.f32.xlu1 %v1268_v12  ;;  %v2575_v12 = vld [vmem:[%s4137_s1 + $0x128] ss:$0 sm:$0xff] }
 0x8b9   :  { %1272 = vadd.xlane.f32.xlu0 %v1271_v14 }
 0x8bb   :  { %1275 = vadd.xlane.f32.xlu1 %v1274_v16 }
 0x93a   :  { %v1253_v21 = vpop.xlane.xlu0 %1252 }
 0x93b   :  { %v1259_v33 = vmul.f32 0.03125, %v1253_v21 }
 0x93c   :  { %v1256_v1 = vpop.xlane.xlu1 %1255 }
 0x93d   :  { %v1260_v41 = vmul.f32 0.03125, %v1256_v1  ;;  %v1283_v32 = vmul.f32 %v1259_v33, %v1259_v33  ;;  %v1291_v18 = vsub.f32 %v3769_v52, %v1259_v33 }
 0x93e   :  { %v1247_v25 = vpop.xlane.xlu0 %1246 }
 0x93f   :  { %v1257_v2 = vmul.f32 0.03125, %v1247_v25  ;;  %v1284_v57 = vmul.f32 %v1260_v41, %v1260_v41  ;;  %v2576_v25 = vld [vmem:[%s4137_s1 + $0x129] ss:$0 sm:$0xff] }
 0x940   :  { %v1250_v26 = vpop.xlane.xlu1 %1249 }
 0x941   :  { %v1258_v29 = vmul.f32 0.03125, %v1250_v26  ;;  %v1281_v35 = vmul.f32 %v1257_v2, %v1257_v2  ;;  %v1289_v49 = vsub.f32 %v3773_v3, %v1257_v2  ;;  %v1292_v2 = vsub.f32 %v3775_v6, %v1260_v41  ;;  %v2577_v41 = vld [vmem:[%s4137_s1 + $0x12a] ss:$0 sm:$0xff] }
 0x942   :  { %v1267_v31 = vpop.xlane.xlu0 %1266 }
 0x943   :  { %v1277_v38 = vmul.f32 0.03125, %v1267_v31  ;;  %v1282_v47 = vmul.f32 %v1258_v29, %v1258_v29  ;;  %v1290_v10 = vsub.f32 %v3779_v15, %v1258_v29 }
 0x944   :  { %v1270_v42 = vpop.xlane.xlu1 %1269 }
 0x945   :  { %v1285_v48 = vsub.f32 %v1277_v38, %v1281_v35  ;;  %v1278_v45 = vmul.f32 0.03125, %v1270_v42 }
 0x946   :  { %v1273_v5 = vpop.xlane.xlu0 %1272 }
 0x947   :  { %v1293_v27 = vadd.f32 1e-12, %v1285_v48  ;;  %v1286_v36 = vsub.f32 %v1278_v45, %v1282_v47  ;;  %v1279_v55 = vmul.f32 0.03125, %v1273_v5 }
 0x948   :  { %v1276_v40 = vpop.xlane.xlu1 %1275 }
 0x949   :  { %3210 = vrsqrt.f32 %v1293_v27  ;;  %v1294_v51 = vadd.f32 1e-12, %v1286_v36  ;;  %v1287_v17 = vsub.f32 %v1279_v55, %v1283_v32  ;;  %v1280_v0 = vmul.f32 0.03125, %v1276_v40 }
 0x94b   :  { %3212 = vrsqrt.f32 %v1294_v51  ;;  %v1295_v24 = vadd.f32 1e-12, %v1287_v17  ;;  %v1288_v44 = vsub.f32 %v1280_v0, %v1284_v57 }
 0x94d   :  { %3214 = vrsqrt.f32 %v1295_v24  ;;  %v1296_v61 = vadd.f32 1e-12, %v1288_v44 }
 0x94f   :  { %3216 = vrsqrt.f32 %v1296_v61 }
 0x953   :  { %v3211_v8 = vpop.eup %3210 }
 0x954   :  { %v1301_v14 = vmul.f32 %v3211_v8, %v1289_v49 }
 0x955   :  { %v3213_v16 = vpop.eup %3212 }
 0x956   :  { %v1302_v19 = vmul.f32 %v3213_v16, %v1290_v10  ;;  %v1309_v21 = vmul.f32 %v2575_v12, %v1301_v14 }
 0x957   :  { %v3215_v1 = vpop.eup %3214 }
 0x958   :  { %v1303_v26 = vmul.f32 %v3215_v1, %v1291_v18  ;;  %v1310_v31 = vmul.f32 %v2575_v12, %v1302_v19  ;;  %v1317_v42 = vadd.f32 %v2576_v25, %v1309_v21 }
 0x959   :  { %v3217_v35 = vpop.eup %3216 }
 0x95a   :  { %v1304_v38 = vmul.f32 %v3217_v35, %v1292_v2  ;;  %v1318_v47 = vadd.f32 %v2576_v25, %v1310_v31  ;;  %v1311_v29 = vmul.f32 %v2575_v12, %v1303_v26 }
 0x95c   :  { %v1321_v48 = vpack.c.bf16 %v1318_v47, %v1317_v42  ;;  %v1312_v45 = vmul.f32 %v2575_v12, %v1304_v38  ;;  %v1319_v33 = vadd.f32 %v2576_v25, %v1311_v29 }
 0x95e   :  { %2901 = vmatprep.mubr.msk.bf16.mxu0 %vm57_vm0, %v1321_v48  ;;  %v1320_v5 = vadd.f32 %v2576_v25, %v1312_v45 }
 0x960   :  { %v1322_v32 = vpack.c.bf16 %v1320_v5, %v1319_v33 }
 0x962   :  { %2902 = vmatmul.mubr.msk.bf16.vlgmr.msra.gmra.mrb[16].mxu0 %vm57_vm0, %v1322_v32 }
 0xa35   :  { %v2903_v27 = vpop.f32.mrb[16].mxu0 }
 0xa36   :  { %v1393_v36 = vadd.f32 %v2903_v27, %v2577_v41  ;;  %v1384_v55 = vpop.f32.mrb[17].mxu0 }
 0xa37   :  { %v1385_v57 = vadd.f32 %v2577_v41, %v1384_v55  ;;  %v2904_v40 = vpop.f32.mrb[18].mxu0 }
 0xa38   :  { %v1396_v51 = vadd.f32 %v2904_v40, %v2577_v41  ;;  %v1387_v17 = vpop.f32.mrb[19].mxu0  ;;  %v3821_v0 = vmul.f32 %v1393_v36, %v3593_v11  ;;  %v3824_v24 = vmul.f32 %v1393_v36, %v3614_v37  ;;  %v3827_v44 = vmul.f32 %v1393_v36, %v3640_v50 }
 0xa39   :  { %v1388_v61 = vadd.f32 %v2577_v41, %v1387_v17  ;;  %v3830_v49 = vmul.f32 %v1385_v57, %v3582_v60  ;;  %v3833_v8 = vmul.f32 %v1385_v57, %v3605_v30  ;;  %v3836_v12 = vmul.f32 %v1385_v57, %v3626_v43 }
 0xa3a   :  { %v1400_v10 = vpack.c.bf16 %v1396_v51, %v1393_v36  ;;  %v3839_v11 = vmul.f32 %v1396_v51, %v3598_v22  ;;  %v3842_v37 = vmul.f32 %v1396_v51, %v3616_v39  ;;  %v3845_v50 = vmul.f32 %v1396_v51, %v3645_v54 }
 0xa3b   :  { %v1399_v14 = vpack.c.bf16 %v1388_v61, %v1385_v57  ;;  %v3848_v60 = vmul.f32 %v1388_v61, %v3584_v4  ;;  %v3851_v30 = vmul.f32 %v1388_v61, %v3607_v34  ;;  %v3854_v43 = vmul.f32 %v1388_v61, %v3630_v46 }
 0xa3c   :  { %1405 = vrot.lane.b32.xlu1 %v1400_v10, %s3263_s30  ;;  %v1865_v22 = vpack.c.bf16 %v3839_v11, %v3821_v0  ;;  %v1867_v39 = vpack.c.bf16 %v3842_v37, %v3824_v24  ;;  %v1869_v54 = vpack.c.bf16 %v3845_v50, %v3827_v44  ;;  %v3872_v16 = vmul.f32 %v1385_v57, %v3653_v58 }
 0xa3d   :  { %1403 = vrot.lane.b32.xlu0 %v1399_v14, %s3263_s30  ;;  %2909 = vmatprep.mubr.msk.bf16.mxu0 %vm221_vm1, %v1399_v14  ;;  %v1864_v4 = vpack.c.bf16 %v3848_v60, %v3830_v49  ;;  %v1866_v34 = vpack.c.bf16 %v3851_v30, %v3833_v8  ;;  %v1868_v46 = vpack.c.bf16 %v3854_v43, %v3836_v12 }
 0xa3e   :  { %v3875_v18 = vmul.f32 %v1388_v61, %v3655_v62  ;;  %v3878_v19 = vmul.f32 %v1393_v36, %v3662_v7  ;;  %v3881_v21 = vmul.f32 %v1396_v51, %v3664_v9 }
 0xa40   :  { %1476 = vrot.lane.b32.xlu1 %v1399_v14, %s3262_s29  ;;  %v1870_v1 = vpack.c.bf16 %v3875_v18, %v3872_v16  ;;  %v1871_v25 = vpack.c.bf16 %v3881_v21, %v3878_v19  ;;  %v3259_v16 = vld [vmem:[%s4137_s1 + $0x8] sm:$0xff] }
 0xa41   :  { %1565 = vrot.lane.b32.xlu0 %v1399_v14, %s3264_s4 }
 0xa44   :  { %1478 = vrot.lane.b32.xlu1 %v1400_v10, %s3262_s29 }
 0xa45   :  { %1654 = vrot.lane.b32.xlu0 %v1399_v14, %s3265_s5 }
 0xa48   :  { %1472 = vrot.lane.b32.xlu1 %v1399_v14, %s3266_s6 }
 0xa49   :  { %1567 = vrot.lane.b32.xlu0 %v1400_v10, %s3264_s4 }
 0xa4c   :  { %1474 = vrot.lane.b32.xlu1 %v1400_v10, %s3266_s6 }
 0xa4d   :  { %1561 = vrot.lane.b32.xlu0 %v1399_v14, %s3267_s7 }
 0xa50   :  { %1656 = vrot.lane.b32.xlu1 %v1400_v10, %s3265_s5 }
 0xa51   :  { %1650 = vrot.lane.b32.xlu0 %v1399_v14, %s3268_s8 }
 0xa54   :  { %1563 = vrot.lane.b32.xlu1 %v1400_v10, %s3267_s7 }
 0xa58   :  { %1652 = vrot.lane.b32.xlu1 %v1400_v10, %s3268_s8 }
 0xaae   :  { %v1406_v58 = vpop.permute.xlu1 %1405 }
 0xaaf   :  { %v1404_v62 = vpop.permute.xlu0 %1403  ;;  %v1417_v38 = vsel %vm221_vm1, %v1406_v58, 0 }
 0xab0   :  { %v1414_v7 = vsel %vm221_vm1, %v1404_v62, 0  ;;  %3119 = vmatprep.subr.msk.bf16.mxu0 %vm221_vm1, %v1404_v62 }
 0xab1   :  { %2906 = vmatpush3.bf16.xpose.msra.mxu0 %v1414_v7 }
 0xab2   :  { %v1477_v9 = vpop.permute.xlu1 %1476  ;;  %3120 = vmatprep.subr.msk.bf16.mxu0 %vm221_vm1, %v1406_v58 }
 0xab3   :  { %v1566_v2 = vpop.permute.xlu0 %1565  ;;  %v1487_v33 = vsel %vm221_vm1, %v1477_v9, 0 }
 0xab4   :  { %v1576_v26 = vsel %vm221_vm1, %v1566_v2, 0  ;;  %3123 = vmatprep.subr.msk.bf16.mxu1 %vm221_vm1, %v1566_v2 }
 0xab5   :  { %2922 = vmatpush3.bf16.xpose.msra.mxu1 %v1576_v26 }
 0xab6   :  { %v1479_v31 = vpop.permute.xlu1 %1478 }
 0xab7   :  { %v1655_v35 = vpop.permute.xlu0 %1654  ;;  %v1490_v41 = vsel %vm221_vm1, %v1479_v31, 0 }
 0xab8   :  { %v1665_v27 = vsel %vm221_vm1, %v1655_v35, 0 }
 0xab9   :  { %2908 = vmatpush3.bf16.xpose.msra.mxu0 %v1417_v38 }
 0xaba   :  { %v1473_v42 = vpop.permute.xlu1 %1472  ;;  %3121 = vmatprep.subr.msk.bf16.mxu0 %vm221_vm1, %v1477_v9 }
 0xabb   :  { %v1568_v47 = vpop.permute.xlu0 %1567 }
 0xabc   :  { %v1579_v29 = vsel %vm221_vm1, %v1568_v47, 0  ;;  %3124 = vmatprep.subr.msk.bf16.mxu1 %vm221_vm1, %v1568_v47 }
 0xabd   :  { %2924 = vmatpush3.bf16.xpose.msra.mxu1 %v1579_v29 }
 0xabe   :  { %v1475_v48 = vpop.permute.xlu1 %1474  ;;  %3080 = vmatprep.subr.bf16.mxu1 %v3416_v53 }
 0xabf   :  { %v1562_v45 = vpop.permute.xlu0 %1561 }
 0xac0   :  { %2910 = vmatmul.mubr.msk.bf16.vlgmr.msra.gmra.mrb[20].mxu0 %vm221_vm1, %v1400_v10  ;;  %2925 = vmatprep.mubr.msk.bf16.mxu1 %vm221_vm1, %v1562_v45 }
 0xac1   :  { %2914 = vmatpush3.bf16.xpose.msra.mxu0 %v1487_v33  ;;  %2917 = vmatprep.mubr.msk.bf16.mxu0 %vm221_vm1, %v1473_v42 }
 0xac2   :  { %v1657_v5 = vpop.permute.xlu1 %1656  ;;  %3122 = vmatprep.subr.msk.bf16.mxu0 %vm221_vm1, %v1479_v31  ;;  %v3261_v31 = vld [vmem:[%s4137_s1 + $0x18] sm:$0xff] }
 0xac3   :  { %v1651_v36 = vpop.permute.xlu0 %1650 }
 0xac6   :  { %v1564_v32 = vpop.permute.xlu1 %1563 }
 0xac7   :  { %2926 = vmatmul.mubr.msk.bf16.vlgmr.msra.gmra.mrb[24].mxu1 %vm221_vm1, %v1564_v32 }
 0xac8   :  { %3082 = vmatpush3.bf16.msra.mxu1 %v3416_v53  ;;  %v1668_v53 = vsel %vm221_vm1, %v1657_v5, 0 }
 0xac9   :  { %2916 = vmatpush3.bf16.xpose.msra.mxu0 %v1490_v41  ;;  %3084 = vmatprep.subr.bf16.mxu1 %v3428_v56 }
 0xaca   :  { %3125 = vmatprep.subr.msk.bf16.mxu0 %vm221_vm1, %v1655_v35 }
 0xacc   :  { %3086 = vmatpush3.bf16.msra.mxu1 %v3428_v56  ;;  %v1653_v56 = vpop.permute.xlu1 %1652 }
 0xacd   :  { %3088 = vmatprep.subr.bf16.mxu1 %v3438_v59 }
 0xad0   :  { %2918 = vmatmul.mubr.msk.bf16.vlgmr.msra.gmra.mrb[24].mxu0 %vm221_vm1, %v1475_v48  ;;  %3090 = vmatpush3.bf16.msra.mxu1 %v3438_v59 }
 0xad1   :  { %2930 = vmatpush3.bf16.xpose.msra.mxu0 %v1665_v27  ;;  %2933 = vmatprep.mubr.msk.bf16.mxu0 %vm221_vm1, %v1651_v36  ;;  %v3154_v27 = vld [vmem:[%s4136_s2 + $0x80] sm:$0xff]  }
 0xad2   :  { %3126 = vmatprep.subr.msk.bf16.mxu0 %vm221_vm1, %v1657_v5  ;;  %3092 = vmatprep.subr.bf16.mxu1 %v3448_v63 }
 0xad4   :  { %3094 = vmatpush3.bf16.msra.mxu1 %v3448_v63 }
 0xad5   :  { %3096 = vmatprep.subr.bf16.mxu1 %v3460_v13 }
 0xad8   :  { %3098 = vmatpush3.bf16.msra.mxu1 %v3460_v13 }
 0xad9   :  { %2932 = vmatpush3.bf16.xpose.msra.mxu0 %v1668_v53  ;;  %3100 = vmatprep.subr.bf16.mxu1 %v3472_v20 }
 0xadc   :  { %3102 = vmatpush3.bf16.msra.mxu1 %v3472_v20 }
 0xadd   :  { %3104 = vmatprep.subr.bf16.mxu1 %v3484_v23 }
 0xae0   :  { %2934 = vmatmul.mubr.msk.bf16.vlgmr.msra.gmra.mrb[28].mxu0 %vm221_vm1, %v1653_v56  ;;  %3106 = vmatpush3.bf16.msra.mxu1 %v3484_v23 }
 0xae1   :  { %3108 = vmatprep.subr.bf16.mxu1 %v3502_v28 }
 0xae4   :  { %3110 = vmatpush3.bf16.msra.mxu1 %v3502_v28 }
 0xae5   :  { %2995 = vmatprep.subr.bf16.mxu1 %v3154_v27 }
 0xb93   :  { %v2911_v59 = vpop.f32.mrb[20].mxu0 }
 0xb94   :  { %1470 = vst.msk [vmem:[#allocation2 + $0x10] sm:$0xff] %vm57_vm0, %v2911_v59  ;;  %v1453_v63 = vpop.f32.mrb[21].mxu0 }
 0xb95   :  { %1468 = vst.msk [vmem:[#allocation2] sm:$0xff] %vm57_vm0, %v1453_v63  ;;  %v2912_v13 = vpop.f32.mrb[22].mxu0 }
 0xb96   :  { %1471 = vst.msk [vmem:[#allocation2 + $0x18] sm:$0xff] %vm57_vm0, %v2912_v13  ;;  %v1456_v20 = vpop.f32.mrb[23].mxu0 }
 0xb97   :  { %1469 = vst.msk [vmem:[#allocation2 + $0x8] sm:$0xff] %vm57_vm0, %v1456_v20 }
 0xb9a   :  { %v2927_v55 = vpop.f32.mrb[24].mxu1 }
 0xb9b   :  { %1638 = vrot.lane.b32.xlu0 %v2927_v55, %s3270_s25  ;;  %v1615_v23 = vpop.f32.mrb[25].mxu1 }
 0xb9c   :  { %v2928_v57 = vpop.f32.mrb[26].mxu1 }
 0xb9d   :  { %1640 = vrot.lane.b32.xlu1 %v2928_v57, %s3270_s25  ;;  %v1618_v28 = vpop.f32.mrb[27].mxu1 }
 0xb9f   :  { %1634 = vrot.lane.b32.xlu0 %v1615_v23, %s3270_s25 }
 0xba1   :  { %1636 = vrot.lane.b32.xlu1 %v1618_v28, %s3270_s25 }
 0xba3   :  { %v2919_v40 = vpop.f32.mrb[24].mxu0 }
 0xba4   :  { %1549 = vrot.lane.b32.xlu0 %v2919_v40, %s3269_s9  ;;  %v1526_v51 = vpop.f32.mrb[25].mxu0 }
 0xba5   :  { %v2920_v17 = vpop.f32.mrb[26].mxu0 }
 0xba6   :  { %1551 = vrot.lane.b32.xlu1 %v2920_v17, %s3269_s9  ;;  %v1529_v61 = vpop.f32.mrb[27].mxu0 }
 0xba8   :  { %1545 = vrot.lane.b32.xlu0 %v1526_v51, %s3269_s9 }
 0xbaa   :  { %1547 = vrot.lane.b32.xlu1 %v1529_v61, %s3269_s9  ;;  %v3155_v61 = vld [vmem:[%s4136_s2 + $0x88] sm:$0xff]  }
 0xbb3   :  { %v2935_v10 = vpop.f32.mrb[28].mxu0 }
 0xbb4   :  { %v1704_v14 = vpop.f32.mrb[29].mxu0 }
 0xbb5   :  { %1723 = vrot.lane.b32.xlu0 %v1704_v14, %s3263_s30  ;;  %v2936_v58 = vpop.f32.mrb[30].mxu0 }
 0xbb6   :  { %v1707_v62 = vpop.f32.mrb[31].mxu0 }
 0xbb7   :  { %1725 = vrot.lane.b32.xlu1 %v1707_v62, %s3263_s30 }
 0xbb9   :  { %1727 = vrot.lane.b32.xlu0 %v2935_v10, %s3263_s30 }
 0xbbb   :  { %1729 = vrot.lane.b32.xlu1 %v2936_v58, %s3263_s30 }
 0xbbd   :  { %1882 = vrot.lane.b32.xlu0 %v1864_v4, %s3270_s25 }
 0xbbf   :  { %1884 = vrot.lane.b32.xlu1 %v1865_v22, %s3270_s25 }
 0xbc1   :  { %1886 = vrot.lane.b32.xlu0 %v1866_v34, %s3270_s25 }
 0xbc3   :  { %1888 = vrot.lane.b32.xlu1 %v1867_v39, %s3270_s25 }
 0xbc5   :  { %1890 = vrot.lane.b32.xlu0 %v1868_v46, %s3270_s25 }
 0xbc7   :  { %1892 = vrot.lane.b32.xlu1 %v1869_v54, %s3270_s25  ;;  %v3258_v54 = vld [vmem:[%s4137_s1] sm:$0xff] }
 0xbc9   :  { %1894 = vrot.lane.b32.xlu0 %v1870_v1, %s3270_s25 }
 0xbcb   :  { %1896 = vrot.lane.b32.xlu1 %v1871_v25, %s3270_s25  ;;  %v3260_v25 = vld [vmem:[%s4137_s1 + $0x10] sm:$0xff] }
 0xc0d   :  { %v1639_v0 = vpop.permute.xlu0 %1638 }
 0xc0f   :  { %v1641_v24 = vpop.permute.xlu1 %1640 }
 0xc11   :  { %v1635_v49 = vpop.permute.xlu0 %1634 }
 0xc13   :  { %v1637_v8 = vpop.permute.xlu1 %1636 }
 0xc16   :  { %v1550_v12 = vpop.permute.xlu0 %1549 }
 0xc17   :  { %1559 = vst.msk [vmem:[#allocation2 + $0x10] sm:$0xff] %vm372_vm2, %v1550_v12 }
 0xc18   :  { %1648 = vst.msk [vmem:[#allocation2 + $0x10] sm:$0xff] %vm462_vm3, %v1639_v0  ;;  %v1552_v44 = vpop.permute.xlu1 %1551 }
 0xc19   :  { %1560 = vst.msk [vmem:[#allocation2 + $0x18] sm:$0xff] %vm372_vm2, %v1552_v44 }
 0xc1a   :  { %1649 = vst.msk [vmem:[#allocation2 + $0x18] sm:$0xff] %vm462_vm3, %v1641_v24  ;;  %v1546_v11 = vpop.permute.xlu0 %1545 }
 0xc1b   :  { %1557 = vst.msk [vmem:[#allocation2] sm:$0xff] %vm372_vm2, %v1546_v11 }
 0xc1c   :  { %1646 = vst.msk [vmem:[#allocation2] sm:$0xff] %vm462_vm3, %v1635_v49  ;;  %v1548_v37 = vpop.permute.xlu1 %1547 }
 0xc1d   :  { %1558 = vst.msk [vmem:[#allocation2 + $0x8] sm:$0xff] %vm372_vm2, %v1548_v37 }
 0xc1e   :  { %1647 = vst.msk [vmem:[#allocation2 + $0x8] sm:$0xff] %vm462_vm3, %v1637_v8  ;;  %v2594_v8 = vld [vmem:[%s4137_s1 + $0x12b] ss:$0 sm:$0xff] }
 0xc27   :  { %v1724_v50 = vpop.permute.xlu0 %1723 }
 0xc28   :  { %1735 = vst.msk [vmem:[#allocation2] sm:$0xff] %vm552_vm4, %v1724_v50 }
 0xc29   :  { %v1726_v60 = vpop.permute.xlu1 %1725 }
 0xc2a   :  { %1736 = vst.msk [vmem:[#allocation2 + $0x8] sm:$0xff] %vm552_vm4, %v1726_v60 }
 0xc2b   :  { %v1728_v30 = vpop.permute.xlu0 %1727 }
 0xc2c   :  { %1737 = vst.msk [vmem:[#allocation2 + $0x10] sm:$0xff] %vm552_vm4, %v1728_v30 }
 0xc2d   :  { %v1730_v43 = vpop.permute.xlu1 %1729 }
 0xc2e   :  { %1738 = vst.msk [vmem:[#allocation2 + $0x18] sm:$0xff] %vm552_vm4, %v1730_v43 }
 0xc2f   :  { %v1883_v22 = vpop.permute.xlu0 %1882  ;;  %v1739_v39 = vld [vmem:[#allocation2] sm:$0xff] }
 0xc30   :  { %2975 = vmatprep.subr.bf16.mxu0 %v1883_v22  ;;  %v1743_v4 = vadd.f32 %v3258_v54, %v1739_v39 }
 0xc31   :  { %v1740_v34 = vld [vmem:[#allocation2 + $0x8] sm:$0xff]  ;;  %2976 = vmatpush3.bf16.msra.mxu0 %v1883_v22  ;;  %v1885_v46 = vpop.permute.xlu1 %1884 }
 0xc32   :  { %v1744_v18 = vadd.f32 %v3259_v16, %v1740_v34  ;;  %2977 = vmatprep.subr.bf16.mxu0 %v1885_v46  ;;  %v1747_v19 = vmul.f32 1.442695, %v1743_v4 }
 0xc33   :  { %v1741_v21 = vld [vmem:[#allocation2 + $0x10] sm:$0xff]  ;;  %v1887_v9 = vpop.permute.xlu0 %1886 }
 0xc34   :  { %v1749_v1 = vmul.f32 1.442695, %v1744_v18  ;;  %3218 = vpow2.f32 %v1747_v19  ;;  %v1745_v7 = vadd.f32 %v3260_v25, %v1741_v21  ;;  %v3156_v25 = vld [vmem:[%s4136_s2 + $0x90] sm:$0xff]  }
 0xc35   :  { %2978 = vmatpush3.bf16.msra.mxu0 %v1885_v46  ;;  %v1742_v2 = vld [vmem:[#allocation2 + $0x18] sm:$0xff]  ;;  %v1889_v42 = vpop.permute.xlu1 %1888 }
 0xc36   :  { %3220 = vpow2.f32 %v1749_v1  ;;  %2979 = vmatprep.subr.bf16.mxu0 %v1887_v9  ;;  %v1751_v26 = vmul.f32 1.442695, %v1745_v7  ;;  %v1746_v35 = vadd.f32 %v3261_v31, %v1742_v2  ;;  %v3157_v7 = vld [vmem:[%s4136_s2 + $0x98] sm:$0xff]  }
 0xc37   :  { %v1891_v47 = vpop.permute.xlu0 %1890 }
 0xc38   :  { %3222 = vpow2.f32 %v1751_v26  ;;  %v1753_v38 = vmul.f32 1.442695, %v1746_v35 }
 0xc39   :  { %2980 = vmatpush3.bf16.msra.mxu0 %v1887_v9  ;;  %v1893_v45 = vpop.permute.xlu1 %1892 }
 0xc3a   :  { %2981 = vmatprep.subr.bf16.mxu0 %v1889_v42  ;;  %3224 = vpow2.f32 %v1753_v38 }
 0xc3b   :  { %v1895_v32 = vpop.permute.xlu0 %1894 }
 0xc3d   :  { %2982 = vmatpush3.bf16.msra.mxu0 %v1889_v42  ;;  %v1897_v41 = vpop.permute.xlu1 %1896 }
 0xc3e   :  { %v3219_v29 = vpop.eup %3218  ;;  %2983 = vmatprep.subr.bf16.mxu0 %v1891_v47 }
 0xc3f   :  { %2969 = vmatprep.mubr.f32.mxu1 %v3219_v29 }
 0xc40   :  { %v3221_v48 = vpop.eup %3220 }
 0xc41   :  { %2970 = vmatmul.mubr.f32.vlgmr.msra.gmra.mrb[28].mxu1 %v3221_v48  ;;  %2984 = vmatpush3.bf16.msra.mxu0 %v1891_v47 }
 0xc42   :  { %v3223_v33 = vpop.eup %3222  ;;  %2985 = vmatprep.subr.bf16.mxu0 %v1893_v45  ;;  %2996 = vmatpush3.bf16.msra.mxu1 %v3154_v27 }
 0xc43   :  { %2972 = vmatprep.mubr.f32.mxu1 %v3223_v33  ;;  %2997 = vmatprep.subr.bf16.mxu1 %v3155_v61 }
 0xc44   :  { %v3225_v5 = vpop.eup %3224 }
 0xc45   :  { %2973 = vmatmul.mubr.f32.gmra.mrb[30].mxu1 %v3225_v5  ;;  %2986 = vmatpush3.bf16.msra.mxu0 %v1893_v45 }
 0xc46   :  { %2987 = vmatprep.subr.bf16.mxu0 %v1895_v32  ;;  %2998 = vmatpush3.bf16.msra.mxu1 %v3155_v61 }
 0xc47   :  { %3003 = vmatprep.subr.bf16.mxu1 %v3156_v25 }
 0xc49   :  { %2988 = vmatpush3.bf16.msra.mxu0 %v1895_v32 }
 0xc4a   :  { %2989 = vmatprep.subr.bf16.mxu0 %v1897_v41 }
 0xc4d   :  { %2990 = vmatpush3.bf16.msra.mxu0 %v1897_v41 }
 0xd14   :  { %v2971_v36 = vpop.f32.mrb[28].mxu1 }
 0xd15   :  { %3226 = vrcp.f32 %v2971_v36  ;;  %v1821_v53 = vpop.f32.mrb[29].mxu1 }
 0xd16   :  { %3228 = vrcp.f32 %v1821_v53 }
 0xd18   :  { %v2974_v56 = vpop.f32.mrb[30].mxu1 }
 0xd19   :  { %3230 = vrcp.f32 %v2974_v56  ;;  %v1831_v59 = vpop.f32.mrb[31].mxu1 }
 0xd1a   :  { %3232 = vrcp.f32 %v1831_v59 }
 0xd1f   :  { %v3227_v63 = vpop.eup %3226 }
 0xd20   :  { %v3229_v13 = vpop.eup %3228  ;;  %v1845_v20 = vmul.f32 %v3227_v63, %v3221_v48 }
 0xd21   :  { %v1844_v55 = vmul.f32 %v3229_v13, %v3219_v29 }
 0xd23   :  { %v3231_v23 = vpop.eup %3230  ;;  %v1872_v57 = vpack.c.bf16 %v1845_v20, %v1844_v55 }
 0xd24   :  { %v3233_v28 = vpop.eup %3232  ;;  %v1847_v40 = vmul.f32 %v3231_v23, %v3225_v5 }
 0xd25   :  { %2991 = vmatprep.mubr.bf16.mxu0 %v1872_v57  ;;  %v1846_v51 = vmul.f32 %v3233_v28, %v3223_v33 }
 0xd27   :  { %v1873_v17 = vpack.c.bf16 %v1847_v40, %v1846_v51 }
 0xd29   :  { %2992 = vmatmul.mubr.bf16.vlgmr.msra.gmra.mrb[32].mxu0 %v1873_v17 }
 0xdfc   :  { %v2993_v10 = vpop.f32.mrb[32].mxu0 }
 0xdfd   :  { %v1940_v14 = vpop.f32.mrb[33].mxu0 }
 0xdfe   :  { %v2994_v58 = vpop.f32.mrb[34].mxu0 }
 0xdff   :  { %v1956_v62 = vpack.c.bf16 %v2994_v58, %v2993_v10  ;;  %v1943_v0 = vpop.f32.mrb[35].mxu0  ;;  %v2595_v10 = vld [vmem:[%s4137_s1 + $0x12c] ss:$0 sm:$0xff] }
 0xe00   :  { %v1955_v24 = vpack.c.bf16 %v1943_v0, %v1940_v14 }
 0xe02   :  { %2999 = vmatprep.mubr.msk.bf16.mxu1 %vm57_vm0, %v1955_v24 }
 0xe03   :  { %3000 = vmatmul.mubr.msk.bf16.vlgmr.msra.gmra.mrb[32].mxu1 %vm57_vm0, %v1956_v62 }
 0xe04   :  { %3004 = vmatpush3.bf16.msra.mxu1 %v3156_v25  ;;  %v2597_v25 = vld [vmem:[%s4137_s1 + $0x12e] ss:$0 sm:$0xff] }
 0xe05   :  { %3005 = vmatprep.subr.bf16.mxu1 %v3157_v7 }
 0xe08   :  { %3006 = vmatpush3.bf16.msra.mxu1 %v3157_v7 }
 0xed6   :  { %v3001_v49 = vpop.f32.mrb[32].mxu1 }
 0xed7   :  { %v2030_v12 = vadd.f32 %v3001_v49, %v3769_v52  ;;  %v2013_v44 = vpop.f32.mrb[33].mxu1 }
 0xed8   :  { %v2028_v11 = vadd.f32 %v2013_v44, %v3773_v3  ;;  %v3002_v37 = vpop.f32.mrb[34].mxu1 }
 0xed9   :  { %v4023_v50 = vadd.f32 %v2594_v8, %v2030_v12  ;;  %v2016_v60 = vpop.f32.mrb[35].mxu1  ;;  %v2031_v30 = vadd.f32 %v3002_v37, %v3775_v6  ;;  %v2596_v12 = vld [vmem:[%s4137_s1 + $0x12d] ss:$0 sm:$0xff] }
 0xeda   :  { %v2029_v43 = vadd.f32 %v2016_v60, %v3779_v15  ;;  %v4027_v22 = vadd.f32 %v2594_v8, %v2028_v11 }
 0xedb   :  { %v2049_v39 = vsel %vm57_vm0, %v4023_v50, 0.0  ;;  %v4031_v4 = vadd.f32 %v2594_v8, %v2031_v30  ;;  %v2061_v21 = vmul.f32 %v4023_v50, %v4023_v50 }
 0xedc   :  { %v2038_v54 = vadd.f32 %v2594_v8, %v2029_v43  ;;  %2050 = vadd.xlane.f32.xlu0 %v2049_v39  ;;  %v2043_v34 = vsel %vm57_vm0, %v4027_v22, 0.0  ;;  %v2059_v16 = vmul.f32 %v4027_v22, %v4027_v22 }
 0xedd   :  { %v2062_v15 = vmul.f32 %v4031_v4, %v4031_v4  ;;  %v2052_v46 = vsel %vm57_vm0, %v4031_v4, 0.0  ;;  %v2069_v1 = vsel %vm57_vm0, %v2061_v21, 0.0  ;;  %v3164_v21 = vld [vmem:[%s4136_s2 + $0xd0] sm:$0xff]  }
 0xede   :  { %v2046_v52 = vsel %vm57_vm0, %v2038_v54, 0.0  ;;  %v2060_v3 = vmul.f32 %v2038_v54, %v2038_v54  ;;  %v2063_v19 = vsel %vm57_vm0, %v2059_v16, 0.0  ;;  %v3161_v16 = vld [vmem:[%s4136_s2 + $0xb8] sm:$0xff]  }
 0xedf   :  { %2047 = vadd.xlane.f32.xlu1 %v2046_v52  ;;  %v2072_v18 = vsel %vm57_vm0, %v2062_v15, 0.0  ;;  %v3159_v15 = vld [vmem:[%s4136_s2 + $0xa8] sm:$0xff]  }
 0xee0   :  { %2044 = vadd.xlane.f32.xlu0 %v2043_v34  ;;  %v2066_v6 = vsel %vm57_vm0, %v2060_v3, 0.0 }
 0xee3   :  { %2067 = vadd.xlane.f32.xlu1 %v2066_v6  ;;  %v3158_v6 = vld [vmem:[%s4136_s2 + $0xa0] sm:$0xff]  }
 0xee4   :  { %2053 = vadd.xlane.f32.xlu0 %v2052_v46  ;;  %3011 = vmatprep.subr.bf16.mxu0 %v3158_v6  ;;  %v3160_v46 = vld [vmem:[%s4136_s2 + $0xb0] sm:$0xff]  }
 0xee5   :  { %3012 = vmatpush3.bf16.msra.mxu0 %v3158_v6 }
 0xee6   :  { %3013 = vmatprep.subr.bf16.mxu0 %v3159_v15 }
 0xee7   :  { %2073 = vadd.xlane.f32.xlu1 %v2072_v18  ;;  %v3162_v18 = vld [vmem:[%s4136_s2 + $0xc0] sm:$0xff]  }
 0xee8   :  { %2064 = vadd.xlane.f32.xlu0 %v2063_v19  ;;  %v3163_v19 = vld [vmem:[%s4136_s2 + $0xc8] sm:$0xff]  }
 0xee9   :  { %3014 = vmatpush3.bf16.msra.mxu0 %v3159_v15 }
 0xeea   :  { %3015 = vmatprep.subr.bf16.mxu0 %v3160_v46 }
 0xeec   :  { %2070 = vadd.xlane.f32.xlu0 %v2069_v1  ;;  %v3165_v1 = vld [vmem:[%s4136_s2 + $0xd8] sm:$0xff]  }
 0xeed   :  { %3016 = vmatpush3.bf16.msra.mxu0 %v3160_v46 }
 0xeee   :  { %3017 = vmatprep.subr.bf16.mxu0 %v3161_v16 }
 0xef1   :  { %3018 = vmatpush3.bf16.msra.mxu0 %v3161_v16 }
 0xef2   :  { %3019 = vmatprep.subr.bf16.mxu0 %v3162_v18 }
 0xef5   :  { %3020 = vmatpush3.bf16.msra.mxu0 %v3162_v18 }
 0xef6   :  { %3021 = vmatprep.subr.bf16.mxu0 %v3163_v19 }
 0xef9   :  { %3022 = vmatpush3.bf16.msra.mxu0 %v3163_v19 }
 0xefa   :  { %3023 = vmatprep.subr.bf16.mxu0 %v3164_v21 }
 0xefd   :  { %3024 = vmatpush3.bf16.msra.mxu0 %v3164_v21 }
 0xefe   :  { %3025 = vmatprep.subr.bf16.mxu0 %v3165_v1 }
 0xf01   :  { %3026 = vmatpush3.bf16.msra.mxu0 %v3165_v1  ;;  %v3271_v1 = vmov 0.0  }
 0xf02   :  { %3031 = vmatprep.subr.bf16.mxu1 %v3271_v1 }
 0xf69   :  { %v2051_v9 = vpop.xlane.xlu0 %2050 }
 0xf6a   :  { %v2057_v36 = vmul.f32 0.03125, %v2051_v9 }
 0xf6c   :  { %v2048_v2 = vpop.xlane.xlu1 %2047  ;;  %v2081_v55 = vmul.f32 %v2057_v36, %v2057_v36  ;;  %v2089_v44 = vsub.f32 %v4023_v50, %v2057_v36 }
 0xf6d   :  { %v2056_v26 = vmul.f32 0.03125, %v2048_v2  ;;  %v2045_v31 = vpop.xlane.xlu0 %2044 }
 0xf6e   :  { %v2055_v29 = vmul.f32 0.03125, %v2045_v31 }
 0xf6f   :  { %v2080_v38 = vmul.f32 %v2056_v26, %v2056_v26  ;;  %v2088_v17 = vsub.f32 %v2038_v54, %v2056_v26 }
 0xf70   :  { %v2068_v35 = vpop.xlane.xlu1 %2067  ;;  %v2079_v53 = vmul.f32 %v2055_v29, %v2055_v29  ;;  %v2087_v58 = vsub.f32 %v4027_v22, %v2055_v29 }
 0xf71   :  { %v2076_v42 = vmul.f32 0.03125, %v2068_v35  ;;  %v2054_v47 = vpop.xlane.xlu0 %2053 }
 0xf72   :  { %v2058_v48 = vmul.f32 0.03125, %v2054_v47 }
 0xf73   :  { %v2084_v45 = vsub.f32 %v2076_v42, %v2080_v38 }
 0xf74   :  { %v2082_v33 = vmul.f32 %v2058_v48, %v2058_v48  ;;  %v2074_v5 = vpop.xlane.xlu1 %2073  ;;  %v2090_v62 = vsub.f32 %v4031_v4, %v2058_v48 }
 0xf75   :  { %v2092_v32 = vadd.f32 1e-12, %v2084_v45  ;;  %v2078_v41 = vmul.f32 0.03125, %v2074_v5  ;;  %v2065_v27 = vpop.xlane.xlu0 %2064 }
 0xf76   :  { %v2075_v56 = vmul.f32 0.03125, %v2065_v27 }
 0xf77   :  { %3234 = vrsqrt.f32 %v2092_v32  ;;  %v2086_v59 = vsub.f32 %v2078_v41, %v2082_v33 }
 0xf78   :  { %v2083_v63 = vsub.f32 %v2075_v56, %v2079_v53 }
 0xf79   :  { %v2094_v13 = vadd.f32 1e-12, %v2086_v59  ;;  %v2071_v20 = vpop.xlane.xlu0 %2070 }
 0xf7a   :  { %v2091_v23 = vadd.f32 1e-12, %v2083_v63  ;;  %v2077_v57 = vmul.f32 0.03125, %v2071_v20 }
 0xf7b   :  { %3236 = vrsqrt.f32 %v2094_v13 }
 0xf7c   :  { %3238 = vrsqrt.f32 %v2091_v23  ;;  %v2085_v28 = vsub.f32 %v2077_v57, %v2081_v55 }
 0xf7e   :  { %v2093_v40 = vadd.f32 1e-12, %v2085_v28 }
 0xf80   :  { %3240 = vrsqrt.f32 %v2093_v40 }
 0xf81   :  { %v3235_v51 = vpop.eup %3234 }
 0xf82   :  { %v2100_v61 = vmul.f32 %v3235_v51, %v2088_v17 }
 0xf84   :  { %v2108_v8 = vmul.f32 %v2595_v10, %v2100_v61 }
 0xf85   :  { %v3237_v14 = vpop.eup %3236 }
 0xf86   :  { %v3239_v0 = vpop.eup %3238  ;;  %v2102_v24 = vmul.f32 %v3237_v14, %v2090_v62  ;;  %v2116_v43 = vadd.f32 %v2596_v12, %v2108_v8 }
 0xf87   :  { %v2099_v49 = vmul.f32 %v3239_v0, %v2087_v58 }
 0xf88   :  { %v2110_v39 = vmul.f32 %v2595_v10, %v2102_v24 }
 0xf89   :  { %v2107_v11 = vmul.f32 %v2595_v10, %v2099_v49 }
 0xf8a   :  { %v3241_v37 = vpop.eup %3240  ;;  %v2118_v3 = vadd.f32 %v2596_v12, %v2110_v39  ;;  %v2610_v39 = vld [vmem:[%s4137_s1 + $0x12f] ss:$0 sm:$0xff] }
 0xf8b   :  { %v2101_v60 = vmul.f32 %v3241_v37, %v2089_v44  ;;  %v2115_v30 = vadd.f32 %v2596_v12, %v2107_v11 }
 0xf8d   :  { %v2119_v54 = vpack.c.bf16 %v2116_v43, %v2115_v30  ;;  %v2109_v52 = vmul.f32 %v2595_v10, %v2101_v60 }
 0xf8f   :  { %3007 = vmatprep.mubr.msk.bf16.mxu1 %vm57_vm0, %v2119_v54  ;;  %v2117_v4 = vadd.f32 %v2596_v12, %v2109_v52 }
 0xf91   :  { %v2120_v34 = vpack.c.bf16 %v2118_v3, %v2117_v4 }
 0xf93   :  { %3008 = vmatmul.mubr.msk.bf16.vlgmr.msra.gmra.mrb[36].mxu1 %vm57_vm0, %v2120_v34 }
 0xf94   :  { %3035 = vmatprep.mubr.msk.bf16.mxu1 %vm3272_vm5, %v3271_v1 }
0x1066   :  { %v3009_v7 = vpop.f32.mrb[36].mxu1 }
0x1067   :  { %v2191_v9 = vadd.f32 %v3009_v7, %v2597_v25  ;;  %v2182_v2 = vpop.f32.mrb[37].mxu1 }
0x1068   :  { %v2183_v26 = vadd.f32 %v2597_v25, %v2182_v2  ;;  %v3010_v31 = vpop.f32.mrb[38].mxu1 }
0x1069   :  { %v2203_v35 = vmul.f32 0.044715, %v2191_v9  ;;  %v2194_v38 = vadd.f32 %v3010_v31, %v2597_v25  ;;  %v2185_v42 = vpop.f32.mrb[39].mxu1  ;;  %v2199_v58 = vmul.f32 0.5, %v2191_v9 }
0x106a   :  { %v2201_v47 = vmul.f32 0.044715, %v2183_v26  ;;  %v2186_v29 = vadd.f32 %v2597_v25, %v2185_v42  ;;  %v2197_v24 = vmul.f32 0.5, %v2183_v26  ;;  %v3167_v25 = vld [vmem:[%s4136_s2 + $0xe8] sm:$0xff]  }
0x106b   :  { %v2207_v48 = vmul.f32 %v2203_v35, %v2191_v9  ;;  %v2204_v45 = vmul.f32 0.044715, %v2194_v38  ;;  %v2200_v62 = vmul.f32 0.5, %v2194_v38 }
0x106c   :  { %v2205_v33 = vmul.f32 %v2201_v47, %v2183_v26  ;;  %v2202_v5 = vmul.f32 0.044715, %v2186_v29  ;;  %v2198_v49 = vmul.f32 0.5, %v2186_v29 }
0x106d   :  { %v2211_v32 = vmul.f32 %v2207_v48, %v2191_v9  ;;  %v2208_v41 = vmul.f32 %v2204_v45, %v2194_v38 }
0x106e   :  { %v2209_v27 = vmul.f32 %v2205_v33, %v2183_v26  ;;  %v2206_v36 = vmul.f32 %v2202_v5, %v2186_v29 }
0x106f   :  { %v2215_v53 = vadd.f32 %v2211_v32, %v2191_v9  ;;  %v2212_v56 = vmul.f32 %v2208_v41, %v2194_v38 }
0x1070   :  { %v2210_v59 = vmul.f32 %v2206_v36, %v2186_v29  ;;  %v2213_v63 = vadd.f32 %v2209_v27, %v2183_v26  ;;  %v2611_v36 = vld [vmem:[%s4137_s1 + $0x130] ss:$0 sm:$0xff] }
0x1071   :  { %v2219_v13 = vmul.f32 0.7978846, %v2215_v53  ;;  %v2216_v20 = vadd.f32 %v2212_v56, %v2194_v38 }
0x1072   :  { %v2214_v55 = vadd.f32 %v2210_v59, %v2186_v29  ;;  %v2217_v23 = vmul.f32 0.7978846, %v2213_v63  ;;  %v2612_v63 = vld [vmem:[%s4137_s1 + $0x131] ss:$0 sm:$0xff] }
0x1073   :  { %3242 = vtanh.f32 %v2219_v13  ;;  %v2220_v57 = vmul.f32 0.7978846, %v2216_v20 }
0x1074   :  { %v2218_v28 = vmul.f32 0.7978846, %v2214_v55  ;;  %3244 = vtanh.f32 %v2217_v23 }
0x1075   :  { %3246 = vtanh.f32 %v2220_v57 }
0x1076   :  { %3248 = vtanh.f32 %v2218_v28  ;;  %v3168_v28 = vld [vmem:[%s4136_s2 + $0xf0] sm:$0xff]  }
0x107d   :  { %v3243_v40 = vpop.eup %3242 }
0x107e   :  { %v3245_v51 = vpop.eup %3244  ;;  %v2227_v17 = vadd.f32 1.0, %v3243_v40  ;;  %v3169_v40 = vld [vmem:[%s4136_s2 + $0xf8] sm:$0xff]  }
0x107f   :  { %v3247_v61 = vpop.eup %3246  ;;  %v2225_v10 = vadd.f32 1.0, %v3245_v51  ;;  %v2613_v51 = vld [vmem:[%s4137_s1 + $0x132] ss:$0 sm:$0xff] }
0x1080   :  { %v3249_v14 = vpop.eup %3248  ;;  %v2228_v0 = vadd.f32 1.0, %v3247_v61  ;;  %v2231_v12 = vmul.f32 %v2227_v17, %v2199_v58 }
0x1081   :  { %v2226_v8 = vadd.f32 1.0, %v3249_v14  ;;  %v2229_v11 = vmul.f32 %v2225_v10, %v2197_v24 }
0x1082   :  { %v2232_v44 = vmul.f32 %v2228_v0, %v2200_v62 }
0x1083   :  { %v2230_v37 = vmul.f32 %v2226_v8, %v2198_v49  ;;  %v2617_v8 = vld [vmem:[%s4137_s1 + $0x133] ss:$0 sm:$0xff] }
0x1084   :  { %v2234_v60 = vpack.c.bf16 %v2232_v44, %v2231_v12 }
0x1085   :  { %v2233_v30 = vpack.c.bf16 %v2230_v37, %v2229_v11 }
0x1087   :  { %3027 = vmatprep.mubr.bf16.mxu0 %v2233_v30 }
0x1088   :  { %3028 = vmatmul.mubr.bf16.vlgmr.msra.gmra.mrb[36].mxu0 %v2234_v60 }
0x115b   :  { %v3029_v43 = vpop.f32.mrb[36].mxu0 }
0x115c   :  { %v2347_v54 = vadd.f32 %v3029_v43, %v4023_v50  ;;  %v2333_v52 = vpop.f32.mrb[37].mxu0 }
0x115d   :  { %v2346_v4 = vadd.f32 %v2333_v52, %v4027_v22  ;;  %v3030_v3 = vpop.f32.mrb[38].mxu0  ;;  %v3166_v22 = vld [vmem:[%s4136_s2 + $0xe0] sm:$0xff]  }
0x115e   :  { %v2354_v34 = vadd.f32 %v2610_v39, %v2347_v54  ;;  %v2336_v6 = vpop.f32.mrb[39].mxu0  ;;  %3032 = vmatpush3.bf16.msra.mxu1 %v3166_v22 }
0x115f   :  { %v2353_v15 = vadd.f32 %v2610_v39, %v2346_v4  ;;  %3033 = vmatprep.subr.bf16.mxu1 %v3271_v1 }
0x1160   :  { %v2360_v46 = vsel %vm57_vm0, %v2354_v34, 0.0  ;;  %v2366_v16 = vmul.f32 %v2354_v34, %v2354_v34 }
0x1161   :  { %2361 = vadd.xlane.f32.xlu1 %v2360_v46  ;;  %v2357_v18 = vsel %vm57_vm0, %v2353_v15, 0.0  ;;  %v2365_v19 = vmul.f32 %v2353_v15, %v2353_v15 }
0x1162   :  { %2358 = vadd.xlane.f32.xlu0 %v2357_v18  ;;  %v2370_v21 = vsel %vm57_vm0, %v2366_v16, 0.0  ;;  %3034 = vmatpush3.bf16.msra.mxu1 %v3167_v25 }
0x1163   :  { %v2367_v50 = vsel %vm57_vm0, %v2365_v19, 0.0  ;;  %3039 = vmatprep.subr.bf16.mxu1 %v3271_v1 }
0x1165   :  { %2371 = vadd.xlane.f32.xlu1 %v2370_v21 }
0x1166   :  { %2368 = vadd.xlane.f32.xlu0 %v2367_v50 }
0x11ee   :  { %v2362_v7 = vpop.xlane.xlu1 %2361 }
0x11ef   :  { %v2364_v9 = vmul.f32 0.03125, %v2362_v7  ;;  %v2359_v2 = vpop.xlane.xlu0 %2358 }
0x11f0   :  { %v2363_v26 = vmul.f32 0.03125, %v2359_v2 }
0x11f1   :  { %v2376_v35 = vmul.f32 %v2364_v9, %v2364_v9  ;;  %v2380_v32 = vsub.f32 %v2354_v34, %v2364_v9 }
0x11f2   :  { %v2372_v31 = vpop.xlane.xlu1 %2371  ;;  %v2375_v47 = vmul.f32 %v2363_v26, %v2363_v26  ;;  %v2379_v27 = vsub.f32 %v2353_v15, %v2363_v26 }
0x11f3   :  { %v2374_v38 = vmul.f32 0.03125, %v2372_v31  ;;  %v2369_v42 = vpop.xlane.xlu0 %2368 }
0x11f4   :  { %v2373_v29 = vmul.f32 0.03125, %v2369_v42 }
0x11f5   :  { %v2378_v48 = vsub.f32 %v2374_v38, %v2376_v35 }
0x11f6   :  { %v2377_v45 = vsub.f32 %v2373_v29, %v2375_v47 }
0x11f7   :  { %v2382_v33 = vadd.f32 1e-12, %v2378_v48 }
0x11f8   :  { %v2381_v5 = vadd.f32 1e-12, %v2377_v45 }
0x11f9   :  { %3250 = vrsqrt.f32 %v2382_v33 }
0x11fa   :  { %3252 = vrsqrt.f32 %v2381_v5 }
0x1203   :  { %v3251_v41 = vpop.eup %3250 }
0x1204   :  { %v3253_v53 = vpop.eup %3252  ;;  %v2386_v56 = vmul.f32 %v3251_v41, %v2380_v32 }
0x1205   :  { %v2385_v59 = vmul.f32 %v3253_v53, %v2379_v27 }
0x1206   :  { %v2392_v13 = vmul.f32 %v2611_v36, %v2386_v56 }
0x1207   :  { %v2391_v20 = vmul.f32 %v2611_v36, %v2385_v59 }
0x1208   :  { %v2398_v55 = vadd.f32 %v2612_v63, %v2392_v13 }
0x1209   :  { %v2397_v23 = vadd.f32 %v2612_v63, %v2391_v20 }
0x120b   :  { %v2399_v57 = vpack.c.bf16 %v2398_v55, %v2397_v23 }
0x120d   :  { %3036 = vmatmul.mubr.msk.bf16.vlgmr.msra.gmra.mrb[40].mxu1 %vm57_vm0, %v2399_v57 }
0x120e   :  { %3043 = vmatprep.mubr.msk.bf16.mxu1 %vm3272_vm5, %v3271_v1  ;;  %3040 = vmatpush3.bf16.msra.mxu1 %v3168_v28 }
0x120f   :  { %3041 = vmatprep.subr.bf16.mxu1 %v3271_v1 }
0x1212   :  { %3042 = vmatpush3.bf16.msra.mxu1 %v3169_v40 }
0x12e0   :  { %v2458_v17 = vpop.f32.mrb[40].mxu1 }
0x12e1   :  { %v2459_v61 = vadd.f32 %v2613_v51, %v2458_v17  ;;  %v3037_v10 = vpop.f32.mrb[41].mxu1 }
0x12e2   :  { %v2461_v14 = vpop.f32.mrb[42].mxu1 }
0x12e3   :  { %v2462_v58 = vadd.f32 %v2613_v51, %v2461_v14  ;;  %v3038_v62 = vpop.f32.mrb[43].mxu1  ;;  %3254 = vtanh.f32 %v2459_v61 }
0x12e5   :  { %3256 = vtanh.f32 %v2462_v58 }
0x12ed   :  { %v3255_v0 = vpop.eup %3254 }
0x12ef   :  { %v3257_v24 = vpop.eup %3256 }
0x12f0   :  { %v2467_v49 = vpack.c.bf16 %v3257_v24, %v3255_v0 }
0x12f2   :  { %3044 = vmatmul.mubr.msk.bf16.vlgmr.msra.gmra.mrb[44].mxu1 %vm57_vm0, %v2467_v49 }
0x13c5   :  { %v2526_v12 = vpop.f32.mrb[44].mxu1 }
0x13c6   :  { %v2527_v44 = vadd.f32 %v2617_v8, %v2526_v12  ;;  %v3045_v11 = vpop.f32.mrb[45].mxu1 }
0x13c7   :  { %v2529_v37 = vpop.f32.mrb[46].mxu1 }
0x13c8   :  { %2533 = vst [vmem:[%s4138_s3] sm:$0xff] %v2527_v44  ;;  %v2530_v60 = vadd.f32 %v2617_v8, %v2529_v37  ;;  %v3046_v30 = vpop.f32.mrb[47].mxu1 }
0x13ca   :  { %2534 = vst [vmem:[%s4138_s3 + $0x8] sm:$0xff] %v2530_v60 }

</bundles_post_ra>
